<compile_context>
chip_gen: v7x
topology: tpu7x:2x2x1
jax: 0.10.0
libtpu: 0.0.40
codegen_flags: <defaults>
</compile_context>

<pallas_src>
import functools

import jax
import jax.numpy as jnp
from jax.experimental import pallas as pl
from jax.experimental.pallas import tpu as pltpu


_VMEM = pl.BlockSpec(memory_space=pltpu.MemorySpace.VMEM)


# ---------------------------------------------------------------------------
# Fused Pallas kernel: num_layers x LSTM + (relu -> fc_1 -> relu -> fc_2)
# ---------------------------------------------------------------------------

def _fused_forward_kernel(x_ref, *refs, num_layers, seq_len, batch_pad, hidden):
    """Whole forward pass in one kernel.

    x_ref : (T*Bp, I) bf16, time-major, batch padded to Bp (row t*Bp + b).
    per layer l (3 refs): wih (in_l, 4H) bf16, whh (H, 4H) bf16, bias (1, 4H) f32
    head refs: w1 (H, 128) bf16, b1 (1, 128) f32, w2 (128, Cp) bf16, b2 (1, Cp) f32
    out_ref  : (L*Bp, Cp) f32
    scratch  : ys_ref (T*Bp, H) bf16, hn_ref (L*Bp, H) f32
    Gate columns pre-permuted to (i, f, o | g): one sigmoid block, one tanh block.
    """
    T, Bp, H = seq_len, batch_pad, hidden
    lstm_refs = refs[:3 * num_layers]
    (w1_ref, b1_ref, w2_ref, b2_ref,
     out_ref, ys_ref, hn_ref) = refs[3 * num_layers:]

    layer_in = x_ref[...]                                    # (T*Bp, in_0) bf16
    for layer in range(num_layers):
        wih = lstm_refs[3 * layer][...]                      # (in, 4H) bf16
        whh = lstm_refs[3 * layer + 1][...]                  # (H, 4H)  bf16
        bias = lstm_refs[3 * layer + 2][...]                 # (1, 4H)  f32

        # Hoisted input projection for the whole sequence (off the serial path).
        gx = jnp.dot(layer_in, wih,
                     preferred_element_type=jnp.float32) + bias   # (T*Bp, 4H) f32

        h = jnp.zeros((Bp, H), jnp.float32)
        c = jnp.zeros((Bp, H), jnp.float32)
        hb = h.astype(jnp.bfloat16)
        # T is small and static -> full unroll (straight-line code).  For large
        # T switch to lax.fori_loop(..., unroll=k) to bound vreg live ranges.
        for t in range(T):
            # Bp == 8 => static, sublane-tile-aligned row-block slice of a
            # register-resident value: no masked load on the serial chain.
            gates = gx[t * Bp:(t + 1) * Bp, :] + jnp.dot(
                hb, whh, preferred_element_type=jnp.float32)      # (Bp, 4H) f32
            # Note: whh is loop-invariant; pltpu.matmul_push_rhs /
            # matmul_acc_lhs could hold it resident in the MXU across all T
            # steps -- kept as jnp.dot for lowering robustness at these shapes.
            sig = jax.nn.sigmoid(gates[:, :3 * H])                # i | f | o
            g = jnp.tanh(gates[:, 3 * H:])
            c = sig[:, H:2 * H] * c + sig[:, :H] * g
            h = sig[:, 2 * H:3 * H] * jnp.tanh(c)
            hb = h.astype(jnp.bfloat16)         # one cast feeds matmul + store
            if layer + 1 < num_layers:
                ys_ref[pl.ds(t * Bp, Bp), :] = hb   # aligned store, off chain
        hn_ref[pl.ds(layer * Bp, Bp), :] = h

        # TODO(synk): inter-layer dropout (p=0.2) omitted (eval-mode semantics).
        if layer + 1 < num_layers:
            layer_in = ys_ref[...]                               # (T*Bp, H) bf16

    # hn.view(-1, H): layer-major then (padded) batch.  relu -> fc_1 -> relu -> fc_2.
    a = jnp.maximum(hn_ref[...], 0.0)
    z1 = jnp.dot(a.astype(jnp.bfloat16), w1_ref[...],
                 preferred_element_type=jnp.float32) + b1_ref[...]
    z1 = jnp.maximum(z1, 0.0)
    out_ref[...] = (jnp.dot(z1.astype(jnp.bfloat16), w2_ref[...],
                            preferred_element_type=jnp.float32) + b2_ref[...])


# ---------------------------------------------------------------------------
# Model wrapper
# ---------------------------------------------------------------------------

class LSTMPallas:
    """JAX/Pallas port of the PyTorch LSTM module's forward pass."""

    def __init__(self, num_classes, input_size, hidden_size, num_layers, key):
        self.num_classes = num_classes
        self.input_size = input_size
        self.hidden_size = hidden_size
        self.num_layers = num_layers
        # Lane-dense padded class dimension (unmasked full-tile output stores).
        self.classes_pad = ((num_classes + 127) // 128) * 128

        H = hidden_size
        k = 1.0 / (H ** 0.5)
        keys = jax.random.split(key, 4 * num_layers + 4)
        ki = iter(range(len(keys)))

        def uni(idx, shape, bound):
            return jax.random.uniform(keys[idx], shape, jnp.float32, -bound, bound)

        # Permute gate rows (i, f, g, o) -> (i, f, o, g) so the sigmoid gates
        # are contiguous; done once at init, not in the kernel.
        perm = jnp.concatenate([jnp.arange(0, H), jnp.arange(H, 2 * H),
                                jnp.arange(3 * H, 4 * H), jnp.arange(2 * H, 3 * H)])

        self.lstm_params = []
        for layer in range(num_layers):
            in_sz = input_size if layer == 0 else hidden_size
            w_ih = uni(next(ki), (4 * H, in_sz), k)        # PyTorch weight_ih_l{k}
            w_hh = uni(next(ki), (4 * H, H), k)            # PyTorch weight_hh_l{k}
            b_ih = uni(next(ki), (4 * H,), k)
            b_hh = uni(next(ki), (4 * H,), k)
            wih_t = w_ih[perm, :].T.astype(jnp.bfloat16)   # (in, 4H), pre-transposed
            whh_t = w_hh[perm, :].T.astype(jnp.bfloat16)   # (H, 4H)
            bias = (b_ih + b_hh)[perm].reshape(1, 4 * H)   # combined bias, f32
            self.lstm_params.append((wih_t, whh_t, bias))

        k1 = 1.0 / (H ** 0.5)
        self.w1 = uni(next(ki), (128, H), k1).T.astype(jnp.bfloat16)   # (H, 128)
        self.b1 = uni(next(ki), (1, 128), k1)
        k2 = 1.0 / (128.0 ** 0.5)
        w2_t = uni(next(ki), (num_classes, 128), k2).T                 # (128, C)
        self.w2 = (jnp.zeros((128, self.classes_pad), jnp.float32)
                   .at[:, :num_classes].set(w2_t).astype(jnp.bfloat16))
        b2 = uni(next(ki), (1, num_classes), k2)
        self.b2 = (jnp.zeros((1, self.classes_pad), jnp.float32)
                   .at[:, :num_classes].set(b2))

    def __call__(self, x):
        # x: (B, T, input_size), batch_first like the PyTorch module.
        B, T, _ = x.shape
        Bp = max(8, ((B + 7) // 8) * 8)                # sublane-aligned batch pad

        xt = jnp.transpose(x, (1, 0, 2))               # (T, B, I) time-major
        xt = jnp.pad(xt, ((0, 0), (0, Bp - B), (0, 0)))
        x_flat = xt.reshape(T * Bp, self.input_size).astype(jnp.bfloat16)

        args = [x_flat]
        for wih, whh, bias in self.lstm_params:
            args.extend((wih, whh, bias))
        args.extend((self.w1, self.b1, self.w2, self.b2))

        kernel = functools.partial(
            _fused_forward_kernel, num_layers=self.num_layers,
            seq_len=T, batch_pad=Bp, hidden=self.hidden_size)

        out = pl.pallas_call(
            kernel,
            out_shape=jax.ShapeDtypeStruct(
                (self.num_layers * Bp, self.classes_pad), jnp.float32),
            in_specs=[_VMEM] * len(args),
            out_specs=_VMEM,
            scratch_shapes=[
                pltpu.VMEM((T * Bp, self.hidden_size), jnp.bfloat16),           # per-step h
                pltpu.VMEM((self.num_layers * Bp, self.hidden_size), jnp.float32),  # hn
            ],
            compiler_params=pltpu.CompilerParams(
                vmem_limit_bytes=32 * 1024 * 1024),
        )(*args)

        # Drop batch / class padding; row order = layer-major then batch,
        # matching PyTorch's hn.view(-1, H).
        out = out.reshape(self.num_layers, Bp, self.classes_pad)
        return out[:, :B, :self.num_classes].reshape(
            self.num_layers * B, self.num_classes)


# ---------------------------------------------------------------------------
# Plain-JAX reference (same bf16-operand / f32-accumulate math, no padding)
# ---------------------------------------------------------------------------

def _reference_forward(model, x):
    B, T, _ = x.shape
    H = model.hidden_size
    layer_in = jnp.transpose(x, (1, 0, 2)).reshape(T * B, -1).astype(jnp.bfloat16)
    hn_rows = []
    for wih, whh, bias in model.lstm_params:
        gx = jnp.dot(layer_in, wih, preferred_element_type=jnp.float32) + bias
        h = jnp.zeros((B, H), jnp.float32)
        c = jnp.zeros((B, H), jnp.float32)
        ys = []
        for t in range(T):
            gates = gx[t * B:(t + 1) * B] + jnp.dot(
                h.astype(jnp.bfloat16), whh, preferred_element_type=jnp.float32)
            sig = jax.nn.sigmoid(gates[:, :3 * H])
            g = jnp.tanh(gates[:, 3 * H:])
            c = sig[:, H:2 * H] * c + sig[:, :H] * g
            h = sig[:, 2 * H:3 * H] * jnp.tanh(c)
            ys.append(h)
        hn_rows.append(h)
        layer_in = jnp.concatenate(ys, axis=0).astype(jnp.bfloat16)
    hn = jnp.concatenate(hn_rows, axis=0)
    a = jnp.maximum(hn, 0.0)
    z1 = jnp.maximum(
        jnp.dot(a.astype(jnp.bfloat16), model.w1,
                preferred_element_type=jnp.float32) + model.b1, 0.0)
    z2 = jnp.dot(z1.astype(jnp.bfloat16), model.w2,
                 preferred_element_type=jnp.float32) + model.b2
    return z2[:, :model.num_classes]


# ---------------------------------------------------------------------------
# Main
# ---------------------------------------------------------------------------

if __name__ == "__main__":
    num_classes = 4
    input_size = 16
    hidden_size = 32
    num_layers = 2
    batch = 2
    seq = 8

    key = jax.random.PRNGKey(0)
    k_param, k_x = jax.random.split(key)

    model = LSTMPallas(num_classes, input_size, hidden_size, num_layers, k_param)
    x = jax.random.normal(k_x, (batch, seq, input_size), jnp.float32)

    out = jax.block_until_ready(model(x))
    assert out.shape == (num_layers * batch, num_classes), out.shape

    ref = jax.block_until_ready(_reference_forward(model, x))
    max_diff = float(jnp.max(jnp.abs(out - ref)))
    assert jnp.allclose(out, ref, rtol=2e-2, atol=2e-2), f"max abs diff {max_diff}"

    print("KERNEL_OK")
</pallas_src>

<mosaic_0001>
module attributes {stable_mosaic.version = 11 : i64} {
  func.func @_fused_forward_kernel(%arg0: memref<64x16xbf16, #tpu.memory_space<vmem>>, %arg1: memref<16x128xbf16, #tpu.memory_space<vmem>>, %arg2: memref<32x128xbf16, #tpu.memory_space<vmem>>, %arg3: memref<1x128xf32, #tpu.memory_space<vmem>>, %arg4: memref<32x128xbf16, #tpu.memory_space<vmem>>, %arg5: memref<32x128xbf16, #tpu.memory_space<vmem>>, %arg6: memref<1x128xf32, #tpu.memory_space<vmem>>, %arg7: memref<32x128xbf16, #tpu.memory_space<vmem>>, %arg8: memref<1x128xf32, #tpu.memory_space<vmem>>, %arg9: memref<128x128xbf16, #tpu.memory_space<vmem>>, %arg10: memref<1x128xf32, #tpu.memory_space<vmem>>, %arg11: memref<16x128xf32, #tpu.memory_space<vmem>>, %arg12: memref<64x32xbf16, #tpu.memory_space<vmem>>, %arg13: memref<16x32xf32, #tpu.memory_space<vmem>>) attributes {dimension_semantics = [], scalar_prefetch = 0 : i64, scratch_operands = 2 : i64, tpu.core_type = #tpu.core_type<tc>} {
    %c0 = arith.constant 0 : index
    %c0_0 = arith.constant 0 : index
    %0 = vector.load %arg0[%c0, %c0_0] : memref<64x16xbf16, #tpu.memory_space<vmem>>, vector<64x16xbf16>
    %c0_1 = arith.constant 0 : index
    %c0_2 = arith.constant 0 : index
    %1 = vector.load %arg1[%c0_1, %c0_2] : memref<16x128xbf16, #tpu.memory_space<vmem>>, vector<16x128xbf16>
    %c0_3 = arith.constant 0 : index
    %c0_4 = arith.constant 0 : index
    %2 = vector.load %arg2[%c0_3, %c0_4] : memref<32x128xbf16, #tpu.memory_space<vmem>>, vector<32x128xbf16>
    %c0_5 = arith.constant 0 : index
    %c0_6 = arith.constant 0 : index
    %3 = vector.load %arg3[%c0_5, %c0_6] : memref<1x128xf32, #tpu.memory_space<vmem>>, vector<1x128xf32>
    %cst = arith.constant dense<0.000000e+00> : vector<64x128xf32>
    %4 = tpu.matmul %0, %1, %cst {dimension_numbers = #tpu.dot_dimension_numbers<[1], [0], [0], [1], [0, 0, 1, 1], [], []>} : vector<64x16xbf16>, vector<16x128xbf16>, vector<64x128xf32> -> vector<64x128xf32>
    %5 = vector.broadcast %3 : vector<1x128xf32> to vector<64x128xf32>
    %6 = arith.addf %4, %5 : vector<64x128xf32>
    %cst_7 = arith.constant 0.000000e+00 : f32
    %7 = vector.broadcast %cst_7 : f32 to vector<8x32xf32>
    %cst_8 = arith.constant 0.000000e+00 : f32
    %8 = vector.broadcast %cst_8 : f32 to vector<8x32xf32>
    %9 = arith.truncf %7 : vector<8x32xf32> to vector<8x32xbf16>
    %10 = vector.extract_strided_slice %6 {offsets = [0, 0], sizes = [8, 128], strides = [1, 1]} : vector<64x128xf32> to vector<8x128xf32>
    %cst_9 = arith.constant dense<0.000000e+00> : vector<8x128xf32>
    %11 = tpu.matmul %9, %2, %cst_9 {dimension_numbers = #tpu.dot_dimension_numbers<[1], [0], [0], [1], [0, 0, 1, 1], [], []>} : vector<8x32xbf16>, vector<32x128xbf16>, vector<8x128xf32> -> vector<8x128xf32>
    %12 = arith.addf %10, %11 : vector<8x128xf32>
    %13 = vector.extract_strided_slice %12 {offsets = [0, 0], sizes = [8, 96], strides = [1, 1]} : vector<8x128xf32> to vector<8x96xf32>
    %14 = arith.negf %13 : vector<8x96xf32>
    %15 = math.exp %14 : vector<8x96xf32>
    %cst_10 = arith.constant 1.000000e+00 : f32
    %16 = vector.broadcast %cst_10 : f32 to vector<8x96xf32>
    %17 = arith.addf %16, %15 : vector<8x96xf32>
    %18 = arith.divf %16, %17 : vector<8x96xf32>
    %19 = vector.extract_strided_slice %12 {offsets = [0, 96], sizes = [8, 32], strides = [1, 1]} : vector<8x128xf32> to vector<8x32xf32>
    %20 = math.tanh %19 : vector<8x32xf32>
    %21 = vector.extract_strided_slice %18 {offsets = [0, 32], sizes = [8, 32], strides = [1, 1]} : vector<8x96xf32> to vector<8x32xf32>
    %22 = arith.mulf %21, %8 : vector<8x32xf32>
    %23 = vector.extract_strided_slice %18 {offsets = [0, 0], sizes = [8, 32], strides = [1, 1]} : vector<8x96xf32> to vector<8x32xf32>
    %24 = arith.mulf %23, %20 : vector<8x32xf32>
    %25 = arith.addf %22, %24 : vector<8x32xf32>
    %26 = vector.extract_strided_slice %18 {offsets = [0, 64], sizes = [8, 32], strides = [1, 1]} : vector<8x96xf32> to vector<8x32xf32>
    %27 = math.tanh %25 : vector<8x32xf32>
    %28 = arith.mulf %26, %27 : vector<8x32xf32>
    %29 = arith.truncf %28 : vector<8x32xf32> to vector<8x32xbf16>
    %c0_11 = arith.constant 0 : index
    %c0_12 = arith.constant 0 : index
    %30 = vector.load %arg12[%c0_11, %c0_12] : memref<64x32xbf16, #tpu.memory_space<vmem>>, vector<8x32xbf16>
    tpu.vector_store %arg12[%c0_11, %c0_12], %29 {strides = array<i32>} : memref<64x32xbf16, #tpu.memory_space<vmem>>, vector<8x32xbf16>,
    %31 = vector.extract_strided_slice %6 {offsets = [8, 0], sizes = [8, 128], strides = [1, 1]} : vector<64x128xf32> to vector<8x128xf32>
    %cst_13 = arith.constant dense<0.000000e+00> : vector<8x128xf32>
    %32 = tpu.matmul %29, %2, %cst_13 {dimension_numbers = #tpu.dot_dimension_numbers<[1], [0], [0], [1], [0, 0, 1, 1], [], []>} : vector<8x32xbf16>, vector<32x128xbf16>, vector<8x128xf32> -> vector<8x128xf32>
    %33 = arith.addf %31, %32 : vector<8x128xf32>
    %34 = vector.extract_strided_slice %33 {offsets = [0, 0], sizes = [8, 96], strides = [1, 1]} : vector<8x128xf32> to vector<8x96xf32>
    %35 = arith.negf %34 : vector<8x96xf32>
    %36 = math.exp %35 : vector<8x96xf32>
    %cst_14 = arith.constant 1.000000e+00 : f32
    %37 = vector.broadcast %cst_14 : f32 to vector<8x96xf32>
    %38 = arith.addf %37, %36 : vector<8x96xf32>
    %39 = arith.divf %37, %38 : vector<8x96xf32>
    %40 = vector.extract_strided_slice %33 {offsets = [0, 96], sizes = [8, 32], strides = [1, 1]} : vector<8x128xf32> to vector<8x32xf32>
    %41 = math.tanh %40 : vector<8x32xf32>
    %42 = vector.extract_strided_slice %39 {offsets = [0, 32], sizes = [8, 32], strides = [1, 1]} : vector<8x96xf32> to vector<8x32xf32>
    %43 = arith.mulf %42, %25 : vector<8x32xf32>
    %44 = vector.extract_strided_slice %39 {offsets = [0, 0], sizes = [8, 32], strides = [1, 1]} : vector<8x96xf32> to vector<8x32xf32>
    %45 = arith.mulf %44, %41 : vector<8x32xf32>
    %46 = arith.addf %43, %45 : vector<8x32xf32>
    %47 = vector.extract_strided_slice %39 {offsets = [0, 64], sizes = [8, 32], strides = [1, 1]} : vector<8x96xf32> to vector<8x32xf32>
    %48 = math.tanh %46 : vector<8x32xf32>
    %49 = arith.mulf %47, %48 : vector<8x32xf32>
    %50 = arith.truncf %49 : vector<8x32xf32> to vector<8x32xbf16>
    %c8 = arith.constant 8 : index
    %c0_15 = arith.constant 0 : index
    %51 = vector.load %arg12[%c8, %c0_15] : memref<64x32xbf16, #tpu.memory_space<vmem>>, vector<8x32xbf16>
    tpu.vector_store %arg12[%c8, %c0_15], %50 {strides = array<i32>} : memref<64x32xbf16, #tpu.memory_space<vmem>>, vector<8x32xbf16>,
    %52 = vector.extract_strided_slice %6 {offsets = [16, 0], sizes = [8, 128], strides = [1, 1]} : vector<64x128xf32> to vector<8x128xf32>
    %cst_16 = arith.constant dense<0.000000e+00> : vector<8x128xf32>
    %53 = tpu.matmul %50, %2, %cst_16 {dimension_numbers = #tpu.dot_dimension_numbers<[1], [0], [0], [1], [0, 0, 1, 1], [], []>} : vector<8x32xbf16>, vector<32x128xbf16>, vector<8x128xf32> -> vector<8x128xf32>
    %54 = arith.addf %52, %53 : vector<8x128xf32>
    %55 = vector.extract_strided_slice %54 {offsets = [0, 0], sizes = [8, 96], strides = [1, 1]} : vector<8x128xf32> to vector<8x96xf32>
    %56 = arith.negf %55 : vector<8x96xf32>
    %57 = math.exp %56 : vector<8x96xf32>
    %cst_17 = arith.constant 1.000000e+00 : f32
    %58 = vector.broadcast %cst_17 : f32 to vector<8x96xf32>
    %59 = arith.addf %58, %57 : vector<8x96xf32>
    %60 = arith.divf %58, %59 : vector<8x96xf32>
    %61 = vector.extract_strided_slice %54 {offsets = [0, 96], sizes = [8, 32], strides = [1, 1]} : vector<8x128xf32> to vector<8x32xf32>
    %62 = math.tanh %61 : vector<8x32xf32>
    %63 = vector.extract_strided_slice %60 {offsets = [0, 32], sizes = [8, 32], strides = [1, 1]} : vector<8x96xf32> to vector<8x32xf32>
    %64 = arith.mulf %63, %46 : vector<8x32xf32>
    %65 = vector.extract_strided_slice %60 {offsets = [0, 0], sizes = [8, 32], strides = [1, 1]} : vector<8x96xf32> to vector<8x32xf32>
    %66 = arith.mulf %65, %62 : vector<8x32xf32>
    %67 = arith.addf %64, %66 : vector<8x32xf32>
    %68 = vector.extract_strided_slice %60 {offsets = [0, 64], sizes = [8, 32], strides = [1, 1]} : vector<8x96xf32> to vector<8x32xf32>
    %69 = math.tanh %67 : vector<8x32xf32>
    %70 = arith.mulf %68, %69 : vector<8x32xf32>
    %71 = arith.truncf %70 : vector<8x32xf32> to vector<8x32xbf16>
    %c16 = arith.constant 16 : index
    %c0_18 = arith.constant 0 : index
    %72 = vector.load %arg12[%c16, %c0_18] : memref<64x32xbf16, #tpu.memory_space<vmem>>, vector<8x32xbf16>
    tpu.vector_store %arg12[%c16, %c0_18], %71 {strides = array<i32>} : memref<64x32xbf16, #tpu.memory_space<vmem>>, vector<8x32xbf16>,
    %73 = vector.extract_strided_slice %6 {offsets = [24, 0], sizes = [8, 128], strides = [1, 1]} : vector<64x128xf32> to vector<8x128xf32>
    %cst_19 = arith.constant dense<0.000000e+00> : vector<8x128xf32>
    %74 = tpu.matmul %71, %2, %cst_19 {dimension_numbers = #tpu.dot_dimension_numbers<[1], [0], [0], [1], [0, 0, 1, 1], [], []>} : vector<8x32xbf16>, vector<32x128xbf16>, vector<8x128xf32> -> vector<8x128xf32>
    %75 = arith.addf %73, %74 : vector<8x128xf32>
    %76 = vector.extract_strided_slice %75 {offsets = [0, 0], sizes = [8, 96], strides = [1, 1]} : vector<8x128xf32> to vector<8x96xf32>
    %77 = arith.negf %76 : vector<8x96xf32>
    %78 = math.exp %77 : vector<8x96xf32>
    %cst_20 = arith.constant 1.000000e+00 : f32
    %79 = vector.broadcast %cst_20 : f32 to vector<8x96xf32>
    %80 = arith.addf %79, %78 : vector<8x96xf32>
    %81 = arith.divf %79, %80 : vector<8x96xf32>
    %82 = vector.extract_strided_slice %75 {offsets = [0, 96], sizes = [8, 32], strides = [1, 1]} : vector<8x128xf32> to vector<8x32xf32>
    %83 = math.tanh %82 : vector<8x32xf32>
    %84 = vector.extract_strided_slice %81 {offsets = [0, 32], sizes = [8, 32], strides = [1, 1]} : vector<8x96xf32> to vector<8x32xf32>
    %85 = arith.mulf %84, %67 : vector<8x32xf32>
    %86 = vector.extract_strided_slice %81 {offsets = [0, 0], sizes = [8, 32], strides = [1, 1]} : vector<8x96xf32> to vector<8x32xf32>
    %87 = arith.mulf %86, %83 : vector<8x32xf32>
    %88 = arith.addf %85, %87 : vector<8x32xf32>
    %89 = vector.extract_strided_slice %81 {offsets = [0, 64], sizes = [8, 32], strides = [1, 1]} : vector<8x96xf32> to vector<8x32xf32>
    %90 = math.tanh %88 : vector<8x32xf32>
    %91 = arith.mulf %89, %90 : vector<8x32xf32>
    %92 = arith.truncf %91 : vector<8x32xf32> to vector<8x32xbf16>
    %c24 = arith.constant 24 : index
    %c0_21 = arith.constant 0 : index
    %93 = vector.load %arg12[%c24, %c0_21] : memref<64x32xbf16, #tpu.memory_space<vmem>>, vector<8x32xbf16>
    tpu.vector_store %arg12[%c24, %c0_21], %92 {strides = array<i32>} : memref<64x32xbf16, #tpu.memory_space<vmem>>, vector<8x32xbf16>,
    %94 = vector.extract_strided_slice %6 {offsets = [32, 0], sizes = [8, 128], strides = [1, 1]} : vector<64x128xf32> to vector<8x128xf32>
    %cst_22 = arith.constant dense<0.000000e+00> : vector<8x128xf32>
    %95 = tpu.matmul %92, %2, %cst_22 {dimension_numbers = #tpu.dot_dimension_numbers<[1], [0], [0], [1], [0, 0, 1, 1], [], []>} : vector<8x32xbf16>, vector<32x128xbf16>, vector<8x128xf32> -> vector<8x128xf32>
    %96 = arith.addf %94, %95 : vector<8x128xf32>
    %97 = vector.extract_strided_slice %96 {offsets = [0, 0], sizes = [8, 96], strides = [1, 1]} : vector<8x128xf32> to vector<8x96xf32>
    %98 = arith.negf %97 : vector<8x96xf32>
    %99 = math.exp %98 : vector<8x96xf32>
    %cst_23 = arith.constant 1.000000e+00 : f32
    %100 = vector.broadcast %cst_23 : f32 to vector<8x96xf32>
    %101 = arith.addf %100, %99 : vector<8x96xf32>
    %102 = arith.divf %100, %101 : vector<8x96xf32>
    %103 = vector.extract_strided_slice %96 {offsets = [0, 96], sizes = [8, 32], strides = [1, 1]} : vector<8x128xf32> to vector<8x32xf32>
    %104 = math.tanh %103 : vector<8x32xf32>
    %105 = vector.extract_strided_slice %102 {offsets = [0, 32], sizes = [8, 32], strides = [1, 1]} : vector<8x96xf32> to vector<8x32xf32>
    %106 = arith.mulf %105, %88 : vector<8x32xf32>
    %107 = vector.extract_strided_slice %102 {offsets = [0, 0], sizes = [8, 32], strides = [1, 1]} : vector<8x96xf32> to vector<8x32xf32>
    %108 = arith.mulf %107, %104 : vector<8x32xf32>
    %109 = arith.addf %106, %108 : vector<8x32xf32>
    %110 = vector.extract_strided_slice %102 {offsets = [0, 64], sizes = [8, 32], strides = [1, 1]} : vector<8x96xf32> to vector<8x32xf32>
    %111 = math.tanh %109 : vector<8x32xf32>
    %112 = arith.mulf %110, %111 : vector<8x32xf32>
    %113 = arith.truncf %112 : vector<8x32xf32> to vector<8x32xbf16>
    %c32 = arith.constant 32 : index
    %c0_24 = arith.constant 0 : index
    %114 = vector.load %arg12[%c32, %c0_24] : memref<64x32xbf16, #tpu.memory_space<vmem>>, vector<8x32xbf16>
    tpu.vector_store %arg12[%c32, %c0_24], %113 {strides = array<i32>} : memref<64x32xbf16, #tpu.memory_space<vmem>>, vector<8x32xbf16>,
    %115 = vector.extract_strided_slice %6 {offsets = [40, 0], sizes = [8, 128], strides = [1, 1]} : vector<64x128xf32> to vector<8x128xf32>
    %cst_25 = arith.constant dense<0.000000e+00> : vector<8x128xf32>
    %116 = tpu.matmul %113, %2, %cst_25 {dimension_numbers = #tpu.dot_dimension_numbers<[1], [0], [0], [1], [0, 0, 1, 1], [], []>} : vector<8x32xbf16>, vector<32x128xbf16>, vector<8x128xf32> -> vector<8x128xf32>
    %117 = arith.addf %115, %116 : vector<8x128xf32>
    %118 = vector.extract_strided_slice %117 {offsets = [0, 0], sizes = [8, 96], strides = [1, 1]} : vector<8x128xf32> to vector<8x96xf32>
    %119 = arith.negf %118 : vector<8x96xf32>
    %120 = math.exp %119 : vector<8x96xf32>
    %cst_26 = arith.constant 1.000000e+00 : f32
    %121 = vector.broadcast %cst_26 : f32 to vector<8x96xf32>
    %122 = arith.addf %121, %120 : vector<8x96xf32>
    %123 = arith.divf %121, %122 : vector<8x96xf32>
    %124 = vector.extract_strided_slice %117 {offsets = [0, 96], sizes = [8, 32], strides = [1, 1]} : vector<8x128xf32> to vector<8x32xf32>
    %125 = math.tanh %124 : vector<8x32xf32>
    %126 = vector.extract_strided_slice %123 {offsets = [0, 32], sizes = [8, 32], strides = [1, 1]} : vector<8x96xf32> to vector<8x32xf32>
    %127 = arith.mulf %126, %109 : vector<8x32xf32>
    %128 = vector.extract_strided_slice %123 {offsets = [0, 0], sizes = [8, 32], strides = [1, 1]} : vector<8x96xf32> to vector<8x32xf32>
    %129 = arith.mulf %128, %125 : vector<8x32xf32>
    %130 = arith.addf %127, %129 : vector<8x32xf32>
    %131 = vector.extract_strided_slice %123 {offsets = [0, 64], sizes = [8, 32], strides = [1, 1]} : vector<8x96xf32> to vector<8x32xf32>
    %132 = math.tanh %130 : vector<8x32xf32>
    %133 = arith.mulf %131, %132 : vector<8x32xf32>
    %134 = arith.truncf %133 : vector<8x32xf32> to vector<8x32xbf16>
    %c40 = arith.constant 40 : index
    %c0_27 = arith.constant 0 : index
    %135 = vector.load %arg12[%c40, %c0_27] : memref<64x32xbf16, #tpu.memory_space<vmem>>, vector<8x32xbf16>
    tpu.vector_store %arg12[%c40, %c0_27], %134 {strides = array<i32>} : memref<64x32xbf16, #tpu.memory_space<vmem>>, vector<8x32xbf16>,
    %136 = vector.extract_strided_slice %6 {offsets = [48, 0], sizes = [8, 128], strides = [1, 1]} : vector<64x128xf32> to vector<8x128xf32>
    %cst_28 = arith.constant dense<0.000000e+00> : vector<8x128xf32>
    %137 = tpu.matmul %134, %2, %cst_28 {dimension_numbers = #tpu.dot_dimension_numbers<[1], [0], [0], [1], [0, 0, 1, 1], [], []>} : vector<8x32xbf16>, vector<32x128xbf16>, vector<8x128xf32> -> vector<8x128xf32>
    %138 = arith.addf %136, %137 : vector<8x128xf32>
    %139 = vector.extract_strided_slice %138 {offsets = [0, 0], sizes = [8, 96], strides = [1, 1]} : vector<8x128xf32> to vector<8x96xf32>
    %140 = arith.negf %139 : vector<8x96xf32>
    %141 = math.exp %140 : vector<8x96xf32>
    %cst_29 = arith.constant 1.000000e+00 : f32
    %142 = vector.broadcast %cst_29 : f32 to vector<8x96xf32>
    %143 = arith.addf %142, %141 : vector<8x96xf32>
    %144 = arith.divf %142, %143 : vector<8x96xf32>
    %145 = vector.extract_strided_slice %138 {offsets = [0, 96], sizes = [8, 32], strides = [1, 1]} : vector<8x128xf32> to vector<8x32xf32>
    %146 = math.tanh %145 : vector<8x32xf32>
    %147 = vector.extract_strided_slice %144 {offsets = [0, 32], sizes = [8, 32], strides = [1, 1]} : vector<8x96xf32> to vector<8x32xf32>
    %148 = arith.mulf %147, %130 : vector<8x32xf32>
    %149 = vector.extract_strided_slice %144 {offsets = [0, 0], sizes = [8, 32], strides = [1, 1]} : vector<8x96xf32> to vector<8x32xf32>
    %150 = arith.mulf %149, %146 : vector<8x32xf32>
    %151 = arith.addf %148, %150 : vector<8x32xf32>
    %152 = vector.extract_strided_slice %144 {offsets = [0, 64], sizes = [8, 32], strides = [1, 1]} : vector<8x96xf32> to vector<8x32xf32>
    %153 = math.tanh %151 : vector<8x32xf32>
    %154 = arith.mulf %152, %153 : vector<8x32xf32>
    %155 = arith.truncf %154 : vector<8x32xf32> to vector<8x32xbf16>
    %c48 = arith.constant 48 : index
    %c0_30 = arith.constant 0 : index
    %156 = vector.load %arg12[%c48, %c0_30] : memref<64x32xbf16, #tpu.memory_space<vmem>>, vector<8x32xbf16>
    tpu.vector_store %arg12[%c48, %c0_30], %155 {strides = array<i32>} : memref<64x32xbf16, #tpu.memory_space<vmem>>, vector<8x32xbf16>,
    %157 = vector.extract_strided_slice %6 {offsets = [56, 0], sizes = [8, 128], strides = [1, 1]} : vector<64x128xf32> to vector<8x128xf32>
    %cst_31 = arith.constant dense<0.000000e+00> : vector<8x128xf32>
    %158 = tpu.matmul %155, %2, %cst_31 {dimension_numbers = #tpu.dot_dimension_numbers<[1], [0], [0], [1], [0, 0, 1, 1], [], []>} : vector<8x32xbf16>, vector<32x128xbf16>, vector<8x128xf32> -> vector<8x128xf32>
    %159 = arith.addf %157, %158 : vector<8x128xf32>
    %160 = vector.extract_strided_slice %159 {offsets = [0, 0], sizes = [8, 96], strides = [1, 1]} : vector<8x128xf32> to vector<8x96xf32>
    %161 = arith.negf %160 : vector<8x96xf32>
    %162 = math.exp %161 : vector<8x96xf32>
    %cst_32 = arith.constant 1.000000e+00 : f32
    %163 = vector.broadcast %cst_32 : f32 to vector<8x96xf32>
    %164 = arith.addf %163, %162 : vector<8x96xf32>
    %165 = arith.divf %163, %164 : vector<8x96xf32>
    %166 = vector.extract_strided_slice %159 {offsets = [0, 96], sizes = [8, 32], strides = [1, 1]} : vector<8x128xf32> to vector<8x32xf32>
    %167 = math.tanh %166 : vector<8x32xf32>
    %168 = vector.extract_strided_slice %165 {offsets = [0, 32], sizes = [8, 32], strides = [1, 1]} : vector<8x96xf32> to vector<8x32xf32>
    %169 = arith.mulf %168, %151 : vector<8x32xf32>
    %170 = vector.extract_strided_slice %165 {offsets = [0, 0], sizes = [8, 32], strides = [1, 1]} : vector<8x96xf32> to vector<8x32xf32>
    %171 = arith.mulf %170, %167 : vector<8x32xf32>
    %172 = arith.addf %169, %171 : vector<8x32xf32>
    %173 = vector.extract_strided_slice %165 {offsets = [0, 64], sizes = [8, 32], strides = [1, 1]} : vector<8x96xf32> to vector<8x32xf32>
    %174 = math.tanh %172 : vector<8x32xf32>
    %175 = arith.mulf %173, %174 : vector<8x32xf32>
    %176 = arith.truncf %175 : vector<8x32xf32> to vector<8x32xbf16>
    %c56 = arith.constant 56 : index
    %c0_33 = arith.constant 0 : index
    %177 = vector.load %arg12[%c56, %c0_33] : memref<64x32xbf16, #tpu.memory_space<vmem>>, vector<8x32xbf16>
    tpu.vector_store %arg12[%c56, %c0_33], %176 {strides = array<i32>} : memref<64x32xbf16, #tpu.memory_space<vmem>>, vector<8x32xbf16>,
    %c0_34 = arith.constant 0 : index
    %c0_35 = arith.constant 0 : index
    %178 = vector.load %arg13[%c0_34, %c0_35] : memref<16x32xf32, #tpu.memory_space<vmem>>, vector<8x32xf32>
    tpu.vector_store %arg13[%c0_34, %c0_35], %175 {strides = array<i32>} : memref<16x32xf32, #tpu.memory_space<vmem>>, vector<8x32xf32>,
    %c0_36 = arith.constant 0 : index
    %c0_37 = arith.constant 0 : index
    %179 = vector.load %arg12[%c0_36, %c0_37] : memref<64x32xbf16, #tpu.memory_space<vmem>>, vector<64x32xbf16>
    %c0_38 = arith.constant 0 : index
    %c0_39 = arith.constant 0 : index
    %180 = vector.load %arg4[%c0_38, %c0_39] : memref<32x128xbf16, #tpu.memory_space<vmem>>, vector<32x128xbf16>
    %c0_40 = arith.constant 0 : index
    %c0_41 = arith.constant 0 : index
    %181 = vector.load %arg5[%c0_40, %c0_41] : memref<32x128xbf16, #tpu.memory_space<vmem>>, vector<32x128xbf16>
    %c0_42 = arith.constant 0 : index
    %c0_43 = arith.constant 0 : index
    %182 = vector.load %arg6[%c0_42, %c0_43] : memref<1x128xf32, #tpu.memory_space<vmem>>, vector<1x128xf32>
    %cst_44 = arith.constant dense<0.000000e+00> : vector<64x128xf32>
    %183 = tpu.matmul %179, %180, %cst_44 {dimension_numbers = #tpu.dot_dimension_numbers<[1], [0], [0], [1], [0, 0, 1, 1], [], []>} : vector<64x32xbf16>, vector<32x128xbf16>, vector<64x128xf32> -> vector<64x128xf32>
    %184 = vector.broadcast %182 : vector<1x128xf32> to vector<64x128xf32>
    %185 = arith.addf %183, %184 : vector<64x128xf32>
    %cst_45 = arith.constant 0.000000e+00 : f32
    %186 = vector.broadcast %cst_45 : f32 to vector<8x32xf32>
    %cst_46 = arith.constant 0.000000e+00 : f32
    %187 = vector.broadcast %cst_46 : f32 to vector<8x32xf32>
    %188 = arith.truncf %186 : vector<8x32xf32> to vector<8x32xbf16>
    %189 = vector.extract_strided_slice %185 {offsets = [0, 0], sizes = [8, 128], strides = [1, 1]} : vector<64x128xf32> to vector<8x128xf32>
    %cst_47 = arith.constant dense<0.000000e+00> : vector<8x128xf32>
    %190 = tpu.matmul %188, %181, %cst_47 {dimension_numbers = #tpu.dot_dimension_numbers<[1], [0], [0], [1], [0, 0, 1, 1], [], []>} : vector<8x32xbf16>, vector<32x128xbf16>, vector<8x128xf32> -> vector<8x128xf32>
    %191 = arith.addf %189, %190 : vector<8x128xf32>
    %192 = vector.extract_strided_slice %191 {offsets = [0, 0], sizes = [8, 96], strides = [1, 1]} : vector<8x128xf32> to vector<8x96xf32>
    %193 = arith.negf %192 : vector<8x96xf32>
    %194 = math.exp %193 : vector<8x96xf32>
    %cst_48 = arith.constant 1.000000e+00 : f32
    %195 = vector.broadcast %cst_48 : f32 to vector<8x96xf32>
    %196 = arith.addf %195, %194 : vector<8x96xf32>
    %197 = arith.divf %195, %196 : vector<8x96xf32>
    %198 = vector.extract_strided_slice %191 {offsets = [0, 96], sizes = [8, 32], strides = [1, 1]} : vector<8x128xf32> to vector<8x32xf32>
    %199 = math.tanh %198 : vector<8x32xf32>
    %200 = vector.extract_strided_slice %197 {offsets = [0, 32], sizes = [8, 32], strides = [1, 1]} : vector<8x96xf32> to vector<8x32xf32>
    %201 = arith.mulf %200, %187 : vector<8x32xf32>
    %202 = vector.extract_strided_slice %197 {offsets = [0, 0], sizes = [8, 32], strides = [1, 1]} : vector<8x96xf32> to vector<8x32xf32>
    %203 = arith.mulf %202, %199 : vector<8x32xf32>
    %204 = arith.addf %201, %203 : vector<8x32xf32>
    %205 = vector.extract_strided_slice %197 {offsets = [0, 64], sizes = [8, 32], strides = [1, 1]} : vector<8x96xf32> to vector<8x32xf32>
    %206 = math.tanh %204 : vector<8x32xf32>
    %207 = arith.mulf %205, %206 : vector<8x32xf32>
    %208 = arith.truncf %207 : vector<8x32xf32> to vector<8x32xbf16>
    %209 = vector.extract_strided_slice %185 {offsets = [8, 0], sizes = [8, 128], strides = [1, 1]} : vector<64x128xf32> to vector<8x128xf32>
    %cst_49 = arith.constant dense<0.000000e+00> : vector<8x128xf32>
    %210 = tpu.matmul %208, %181, %cst_49 {dimension_numbers = #tpu.dot_dimension_numbers<[1], [0], [0], [1], [0, 0, 1, 1], [], []>} : vector<8x32xbf16>, vector<32x128xbf16>, vector<8x128xf32> -> vector<8x128xf32>
    %211 = arith.addf %209, %210 : vector<8x128xf32>
    %212 = vector.extract_strided_slice %211 {offsets = [0, 0], sizes = [8, 96], strides = [1, 1]} : vector<8x128xf32> to vector<8x96xf32>
    %213 = arith.negf %212 : vector<8x96xf32>
    %214 = math.exp %213 : vector<8x96xf32>
    %cst_50 = arith.constant 1.000000e+00 : f32
    %215 = vector.broadcast %cst_50 : f32 to vector<8x96xf32>
    %216 = arith.addf %215, %214 : vector<8x96xf32>
    %217 = arith.divf %215, %216 : vector<8x96xf32>
    %218 = vector.extract_strided_slice %211 {offsets = [0, 96], sizes = [8, 32], strides = [1, 1]} : vector<8x128xf32> to vector<8x32xf32>
    %219 = math.tanh %218 : vector<8x32xf32>
    %220 = vector.extract_strided_slice %217 {offsets = [0, 32], sizes = [8, 32], strides = [1, 1]} : vector<8x96xf32> to vector<8x32xf32>
    %221 = arith.mulf %220, %204 : vector<8x32xf32>
    %222 = vector.extract_strided_slice %217 {offsets = [0, 0], sizes = [8, 32], strides = [1, 1]} : vector<8x96xf32> to vector<8x32xf32>
    %223 = arith.mulf %222, %219 : vector<8x32xf32>
    %224 = arith.addf %221, %223 : vector<8x32xf32>
    %225 = vector.extract_strided_slice %217 {offsets = [0, 64], sizes = [8, 32], strides = [1, 1]} : vector<8x96xf32> to vector<8x32xf32>
    %226 = math.tanh %224 : vector<8x32xf32>
    %227 = arith.mulf %225, %226 : vector<8x32xf32>
    %228 = arith.truncf %227 : vector<8x32xf32> to vector<8x32xbf16>
    %229 = vector.extract_strided_slice %185 {offsets = [16, 0], sizes = [8, 128], strides = [1, 1]} : vector<64x128xf32> to vector<8x128xf32>
    %cst_51 = arith.constant dense<0.000000e+00> : vector<8x128xf32>
    %230 = tpu.matmul %228, %181, %cst_51 {dimension_numbers = #tpu.dot_dimension_numbers<[1], [0], [0], [1], [0, 0, 1, 1], [], []>} : vector<8x32xbf16>, vector<32x128xbf16>, vector<8x128xf32> -> vector<8x128xf32>
    %231 = arith.addf %229, %230 : vector<8x128xf32>
    %232 = vector.extract_strided_slice %231 {offsets = [0, 0], sizes = [8, 96], strides = [1, 1]} : vector<8x128xf32> to vector<8x96xf32>
    %233 = arith.negf %232 : vector<8x96xf32>
    %234 = math.exp %233 : vector<8x96xf32>
    %cst_52 = arith.constant 1.000000e+00 : f32
    %235 = vector.broadcast %cst_52 : f32 to vector<8x96xf32>
    %236 = arith.addf %235, %234 : vector<8x96xf32>
    %237 = arith.divf %235, %236 : vector<8x96xf32>
    %238 = vector.extract_strided_slice %231 {offsets = [0, 96], sizes = [8, 32], strides = [1, 1]} : vector<8x128xf32> to vector<8x32xf32>
    %239 = math.tanh %238 : vector<8x32xf32>
    %240 = vector.extract_strided_slice %237 {offsets = [0, 32], sizes = [8, 32], strides = [1, 1]} : vector<8x96xf32> to vector<8x32xf32>
    %241 = arith.mulf %240, %224 : vector<8x32xf32>
    %242 = vector.extract_strided_slice %237 {offsets = [0, 0], sizes = [8, 32], strides = [1, 1]} : vector<8x96xf32> to vector<8x32xf32>
    %243 = arith.mulf %242, %239 : vector<8x32xf32>
    %244 = arith.addf %241, %243 : vector<8x32xf32>
    %245 = vector.extract_strided_slice %237 {offsets = [0, 64], sizes = [8, 32], strides = [1, 1]} : vector<8x96xf32> to vector<8x32xf32>
    %246 = math.tanh %244 : vector<8x32xf32>
    %247 = arith.mulf %245, %246 : vector<8x32xf32>
    %248 = arith.truncf %247 : vector<8x32xf32> to vector<8x32xbf16>
    %249 = vector.extract_strided_slice %185 {offsets = [24, 0], sizes = [8, 128], strides = [1, 1]} : vector<64x128xf32> to vector<8x128xf32>
    %cst_53 = arith.constant dense<0.000000e+00> : vector<8x128xf32>
    %250 = tpu.matmul %248, %181, %cst_53 {dimension_numbers = #tpu.dot_dimension_numbers<[1], [0], [0], [1], [0, 0, 1, 1], [], []>} : vector<8x32xbf16>, vector<32x128xbf16>, vector<8x128xf32> -> vector<8x128xf32>
    %251 = arith.addf %249, %250 : vector<8x128xf32>
    %252 = vector.extract_strided_slice %251 {offsets = [0, 0], sizes = [8, 96], strides = [1, 1]} : vector<8x128xf32> to vector<8x96xf32>
    %253 = arith.negf %252 : vector<8x96xf32>
    %254 = math.exp %253 : vector<8x96xf32>
    %cst_54 = arith.constant 1.000000e+00 : f32
    %255 = vector.broadcast %cst_54 : f32 to vector<8x96xf32>
    %256 = arith.addf %255, %254 : vector<8x96xf32>
    %257 = arith.divf %255, %256 : vector<8x96xf32>
    %258 = vector.extract_strided_slice %251 {offsets = [0, 96], sizes = [8, 32], strides = [1, 1]} : vector<8x128xf32> to vector<8x32xf32>
    %259 = math.tanh %258 : vector<8x32xf32>
    %260 = vector.extract_strided_slice %257 {offsets = [0, 32], sizes = [8, 32], strides = [1, 1]} : vector<8x96xf32> to vector<8x32xf32>
    %261 = arith.mulf %260, %244 : vector<8x32xf32>
    %262 = vector.extract_strided_slice %257 {offsets = [0, 0], sizes = [8, 32], strides = [1, 1]} : vector<8x96xf32> to vector<8x32xf32>
    %263 = arith.mulf %262, %259 : vector<8x32xf32>
    %264 = arith.addf %261, %263 : vector<8x32xf32>
    %265 = vector.extract_strided_slice %257 {offsets = [0, 64], sizes = [8, 32], strides = [1, 1]} : vector<8x96xf32> to vector<8x32xf32>
    %266 = math.tanh %264 : vector<8x32xf32>
    %267 = arith.mulf %265, %266 : vector<8x32xf32>
    %268 = arith.truncf %267 : vector<8x32xf32> to vector<8x32xbf16>
    %269 = vector.extract_strided_slice %185 {offsets = [32, 0], sizes = [8, 128], strides = [1, 1]} : vector<64x128xf32> to vector<8x128xf32>
    %cst_55 = arith.constant dense<0.000000e+00> : vector<8x128xf32>
    %270 = tpu.matmul %268, %181, %cst_55 {dimension_numbers = #tpu.dot_dimension_numbers<[1], [0], [0], [1], [0, 0, 1, 1], [], []>} : vector<8x32xbf16>, vector<32x128xbf16>, vector<8x128xf32> -> vector<8x128xf32>
    %271 = arith.addf %269, %270 : vector<8x128xf32>
    %272 = vector.extract_strided_slice %271 {offsets = [0, 0], sizes = [8, 96], strides = [1, 1]} : vector<8x128xf32> to vector<8x96xf32>
    %273 = arith.negf %272 : vector<8x96xf32>
    %274 = math.exp %273 : vector<8x96xf32>
    %cst_56 = arith.constant 1.000000e+00 : f32
    %275 = vector.broadcast %cst_56 : f32 to vector<8x96xf32>
    %276 = arith.addf %275, %274 : vector<8x96xf32>
    %277 = arith.divf %275, %276 : vector<8x96xf32>
    %278 = vector.extract_strided_slice %271 {offsets = [0, 96], sizes = [8, 32], strides = [1, 1]} : vector<8x128xf32> to vector<8x32xf32>
    %279 = math.tanh %278 : vector<8x32xf32>
    %280 = vector.extract_strided_slice %277 {offsets = [0, 32], sizes = [8, 32], strides = [1, 1]} : vector<8x96xf32> to vector<8x32xf32>
    %281 = arith.mulf %280, %264 : vector<8x32xf32>
    %282 = vector.extract_strided_slice %277 {offsets = [0, 0], sizes = [8, 32], strides = [1, 1]} : vector<8x96xf32> to vector<8x32xf32>
    %283 = arith.mulf %282, %279 : vector<8x32xf32>
    %284 = arith.addf %281, %283 : vector<8x32xf32>
    %285 = vector.extract_strided_slice %277 {offsets = [0, 64], sizes = [8, 32], strides = [1, 1]} : vector<8x96xf32> to vector<8x32xf32>
    %286 = math.tanh %284 : vector<8x32xf32>
    %287 = arith.mulf %285, %286 : vector<8x32xf32>
    %288 = arith.truncf %287 : vector<8x32xf32> to vector<8x32xbf16>
    %289 = vector.extract_strided_slice %185 {offsets = [40, 0], sizes = [8, 128], strides = [1, 1]} : vector<64x128xf32> to vector<8x128xf32>
    %cst_57 = arith.constant dense<0.000000e+00> : vector<8x128xf32>
    %290 = tpu.matmul %288, %181, %cst_57 {dimension_numbers = #tpu.dot_dimension_numbers<[1], [0], [0], [1], [0, 0, 1, 1], [], []>} : vector<8x32xbf16>, vector<32x128xbf16>, vector<8x128xf32> -> vector<8x128xf32>
    %291 = arith.addf %289, %290 : vector<8x128xf32>
    %292 = vector.extract_strided_slice %291 {offsets = [0, 0], sizes = [8, 96], strides = [1, 1]} : vector<8x128xf32> to vector<8x96xf32>
    %293 = arith.negf %292 : vector<8x96xf32>
    %294 = math.exp %293 : vector<8x96xf32>
    %cst_58 = arith.constant 1.000000e+00 : f32
    %295 = vector.broadcast %cst_58 : f32 to vector<8x96xf32>
    %296 = arith.addf %295, %294 : vector<8x96xf32>
    %297 = arith.divf %295, %296 : vector<8x96xf32>
    %298 = vector.extract_strided_slice %291 {offsets = [0, 96], sizes = [8, 32], strides = [1, 1]} : vector<8x128xf32> to vector<8x32xf32>
    %299 = math.tanh %298 : vector<8x32xf32>
    %300 = vector.extract_strided_slice %297 {offsets = [0, 32], sizes = [8, 32], strides = [1, 1]} : vector<8x96xf32> to vector<8x32xf32>
    %301 = arith.mulf %300, %284 : vector<8x32xf32>
    %302 = vector.extract_strided_slice %297 {offsets = [0, 0], sizes = [8, 32], strides = [1, 1]} : vector<8x96xf32> to vector<8x32xf32>
    %303 = arith.mulf %302, %299 : vector<8x32xf32>
    %304 = arith.addf %301, %303 : vector<8x32xf32>
    %305 = vector.extract_strided_slice %297 {offsets = [0, 64], sizes = [8, 32], strides = [1, 1]} : vector<8x96xf32> to vector<8x32xf32>
    %306 = math.tanh %304 : vector<8x32xf32>
    %307 = arith.mulf %305, %306 : vector<8x32xf32>
    %308 = arith.truncf %307 : vector<8x32xf32> to vector<8x32xbf16>
    %309 = vector.extract_strided_slice %185 {offsets = [48, 0], sizes = [8, 128], strides = [1, 1]} : vector<64x128xf32> to vector<8x128xf32>
    %cst_59 = arith.constant dense<0.000000e+00> : vector<8x128xf32>
    %310 = tpu.matmul %308, %181, %cst_59 {dimension_numbers = #tpu.dot_dimension_numbers<[1], [0], [0], [1], [0, 0, 1, 1], [], []>} : vector<8x32xbf16>, vector<32x128xbf16>, vector<8x128xf32> -> vector<8x128xf32>
    %311 = arith.addf %309, %310 : vector<8x128xf32>
    %312 = vector.extract_strided_slice %311 {offsets = [0, 0], sizes = [8, 96], strides = [1, 1]} : vector<8x128xf32> to vector<8x96xf32>
    %313 = arith.negf %312 : vector<8x96xf32>
    %314 = math.exp %313 : vector<8x96xf32>
    %cst_60 = arith.constant 1.000000e+00 : f32
    %315 = vector.broadcast %cst_60 : f32 to vector<8x96xf32>
    %316 = arith.addf %315, %314 : vector<8x96xf32>
    %317 = arith.divf %315, %316 : vector<8x96xf32>
    %318 = vector.extract_strided_slice %311 {offsets = [0, 96], sizes = [8, 32], strides = [1, 1]} : vector<8x128xf32> to vector<8x32xf32>
    %319 = math.tanh %318 : vector<8x32xf32>
    %320 = vector.extract_strided_slice %317 {offsets = [0, 32], sizes = [8, 32], strides = [1, 1]} : vector<8x96xf32> to vector<8x32xf32>
    %321 = arith.mulf %320, %304 : vector<8x32xf32>
    %322 = vector.extract_strided_slice %317 {offsets = [0, 0], sizes = [8, 32], strides = [1, 1]} : vector<8x96xf32> to vector<8x32xf32>
    %323 = arith.mulf %322, %319 : vector<8x32xf32>
    %324 = arith.addf %321, %323 : vector<8x32xf32>
    %325 = vector.extract_strided_slice %317 {offsets = [0, 64], sizes = [8, 32], strides = [1, 1]} : vector<8x96xf32> to vector<8x32xf32>
    %326 = math.tanh %324 : vector<8x32xf32>
    %327 = arith.mulf %325, %326 : vector<8x32xf32>
    %328 = arith.truncf %327 : vector<8x32xf32> to vector<8x32xbf16>
    %329 = vector.extract_strided_slice %185 {offsets = [56, 0], sizes = [8, 128], strides = [1, 1]} : vector<64x128xf32> to vector<8x128xf32>
    %cst_61 = arith.constant dense<0.000000e+00> : vector<8x128xf32>
    %330 = tpu.matmul %328, %181, %cst_61 {dimension_numbers = #tpu.dot_dimension_numbers<[1], [0], [0], [1], [0, 0, 1, 1], [], []>} : vector<8x32xbf16>, vector<32x128xbf16>, vector<8x128xf32> -> vector<8x128xf32>
    %331 = arith.addf %329, %330 : vector<8x128xf32>
    %332 = vector.extract_strided_slice %331 {offsets = [0, 0], sizes = [8, 96], strides = [1, 1]} : vector<8x128xf32> to vector<8x96xf32>
    %333 = arith.negf %332 : vector<8x96xf32>
    %334 = math.exp %333 : vector<8x96xf32>
    %cst_62 = arith.constant 1.000000e+00 : f32
    %335 = vector.broadcast %cst_62 : f32 to vector<8x96xf32>
    %336 = arith.addf %335, %334 : vector<8x96xf32>
    %337 = arith.divf %335, %336 : vector<8x96xf32>
    %338 = vector.extract_strided_slice %331 {offsets = [0, 96], sizes = [8, 32], strides = [1, 1]} : vector<8x128xf32> to vector<8x32xf32>
    %339 = math.tanh %338 : vector<8x32xf32>
    %340 = vector.extract_strided_slice %337 {offsets = [0, 32], sizes = [8, 32], strides = [1, 1]} : vector<8x96xf32> to vector<8x32xf32>
    %341 = arith.mulf %340, %324 : vector<8x32xf32>
    %342 = vector.extract_strided_slice %337 {offsets = [0, 0], sizes = [8, 32], strides = [1, 1]} : vector<8x96xf32> to vector<8x32xf32>
    %343 = arith.mulf %342, %339 : vector<8x32xf32>
    %344 = arith.addf %341, %343 : vector<8x32xf32>
    %345 = vector.extract_strided_slice %337 {offsets = [0, 64], sizes = [8, 32], strides = [1, 1]} : vector<8x96xf32> to vector<8x32xf32>
    %346 = math.tanh %344 : vector<8x32xf32>
    %347 = arith.mulf %345, %346 : vector<8x32xf32>
    %c8_63 = arith.constant 8 : index
    %c0_64 = arith.constant 0 : index
    %348 = vector.load %arg13[%c8_63, %c0_64] : memref<16x32xf32, #tpu.memory_space<vmem>>, vector<8x32xf32>
    tpu.vector_store %arg13[%c8_63, %c0_64], %347 {strides = array<i32>} : memref<16x32xf32, #tpu.memory_space<vmem>>, vector<8x32xf32>,
    %c0_65 = arith.constant 0 : index
    %c0_66 = arith.constant 0 : index
    %349 = vector.load %arg13[%c0_65, %c0_66] : memref<16x32xf32, #tpu.memory_space<vmem>>, vector<16x32xf32>
    %cst_67 = arith.constant 0.000000e+00 : f32
    %350 = vector.broadcast %cst_67 : f32 to vector<16x32xf32>
    %351 = arith.maximumf %349, %350 : vector<16x32xf32>
    %352 = arith.truncf %351 : vector<16x32xf32> to vector<16x32xbf16>
    %c0_68 = arith.constant 0 : index
    %c0_69 = arith.constant 0 : index
    %353 = vector.load %arg7[%c0_68, %c0_69] : memref<32x128xbf16, #tpu.memory_space<vmem>>, vector<32x128xbf16>
    %cst_70 = arith.constant dense<0.000000e+00> : vector<16x128xf32>
    %354 = tpu.matmul %352, %353, %cst_70 {dimension_numbers = #tpu.dot_dimension_numbers<[1], [0], [0], [1], [0, 0, 1, 1], [], []>} : vector<16x32xbf16>, vector<32x128xbf16>, vector<16x128xf32> -> vector<16x128xf32>
    %c0_71 = arith.constant 0 : index
    %c0_72 = arith.constant 0 : index
    %355 = vector.load %arg8[%c0_71, %c0_72] : memref<1x128xf32, #tpu.memory_space<vmem>>, vector<1x128xf32>
    %356 = vector.broadcast %355 : vector<1x128xf32> to vector<16x128xf32>
    %357 = arith.addf %354, %356 : vector<16x128xf32>
    %cst_73 = arith.constant 0.000000e+00 : f32
    %358 = vector.broadcast %cst_73 : f32 to vector<16x128xf32>
    %359 = arith.maximumf %357, %358 : vector<16x128xf32>
    %360 = arith.truncf %359 : vector<16x128xf32> to vector<16x128xbf16>
    %c0_74 = arith.constant 0 : index
    %c0_75 = arith.constant 0 : index
    %361 = vector.load %arg9[%c0_74, %c0_75] : memref<128x128xbf16, #tpu.memory_space<vmem>>, vector<128x128xbf16>
    %cst_76 = arith.constant dense<0.000000e+00> : vector<16x128xf32>
    %362 = tpu.matmul %360, %361, %cst_76 {dimension_numbers = #tpu.dot_dimension_numbers<[1], [0], [0], [1], [0, 0, 1, 1], [], []>} : vector<16x128xbf16>, vector<128x128xbf16>, vector<16x128xf32> -> vector<16x128xf32>
    %c0_77 = arith.constant 0 : index
    %c0_78 = arith.constant 0 : index
    %363 = vector.load %arg10[%c0_77, %c0_78] : memref<1x128xf32, #tpu.memory_space<vmem>>, vector<1x128xf32>
    %364 = vector.broadcast %363 : vector<1x128xf32> to vector<16x128xf32>
    %365 = arith.addf %362, %364 : vector<16x128xf32>
    %c0_79 = arith.constant 0 : index
    %c0_80 = arith.constant 0 : index
    %366 = vector.load %arg11[%c0_79, %c0_80] : memref<16x128xf32, #tpu.memory_space<vmem>>, vector<16x128xf32>
    tpu.vector_store %arg11[%c0_79, %c0_80], %365 {strides = array<i32>} : memref<16x128xf32, #tpu.memory_space<vmem>>, vector<16x128xf32>,
    return
  }
}

</mosaic_0001>

<bundles_post_ra>
// kernel: tpu_custom_call.1
= control target key start
LH: loop header
LB: loop body
LE: loop exit
PB: predicated region body
PF: predicated region fallthrough
CT: control target
= control target key end

     0   :  { %16 = vsyncpa [#allocation5], 0  ;;  %s2882_s0 = inlined_call_operand.vmem [shape: bf16[64,16], index: 0, kind: input, shape index: {}]   ;;  %s2883_s1 = inlined_call_operand.vmem [shape: bf16[16,128], index: 1, kind: input, shape index: {}]   ;;  %s2884_s2 = inlined_call_operand.hbm [shape: bf16[32,128], index: 2, kind: input, shape index: {}]   ;;  %s2885_s3 = inlined_call_operand.vmem [shape: f32[1,128], index: 3, kind: input, shape index: {}]   ;;  %s2886_s4 = inlined_call_operand.hbm [shape: bf16[32,128], index: 4, kind: input, shape index: {}]   ;;  %s2887_s5 = inlined_call_operand.hbm [shape: bf16[32,128], index: 5, kind: input, shape index: {}]   ;;  %s2888_s6 = inlined_call_operand.vmem [shape: f32[1,128], index: 6, kind: input, shape index: {}]   ;;  %s2889_s7 = inlined_call_operand.hbm [shape: bf16[32,128], index: 7, kind: input, shape index: {}]   ;;  %s2890_s8 = inlined_call_operand.hbm [shape: f32[1,128], index: 8, kind: input, shape index: {}]   ;;  %s2891_s9 = inlined_call_operand.vmem [shape: bf16[128,128], index: 9, kind: input, shape index: {}]   ;;  %s2892_s10 = inlined_call_operand.vmem [shape: f32[1,128], index: 10, kind: input, shape index: {}]   ;;  %s2893_s11 = inlined_call_operand.hbm [shape: f32[16,128], index: 11, kind: output, shape index: {}]  }
   0x1   :  { %17 = vsyncpa [#allocation8], 0 }
   0x2   :  { %18 = vsyncpa [#allocation11], 0 }
   0x3   :  { %19 = vsyncpa [#allocation6], 0  ;;  %s2371_s17 = smov [#allocation7]   ;;  %s2372_s19 = smov [#allocation10]  }
   0x4   :  { %s43_s18 = sshll.u32 %s2371_s17, 4  ;;  %s69_s20 = sshll.u32 %s2372_s19, 4  ;;  %s44_s18 = int_to_ptr.vmem [resolvable:$true] %s43_s18  ;;  %s2445_s20 = int_to_ptr.vmem [resolvable:$true] %s69_s20 }
   0x5   :  { %s2231_s23 = scalar_lea.hbm %s2886_s4, 256 }
   0x6   :  { %p2232_p0 = scmp.ne.s32.totalorder %s2886_s4, %s2231_s23  ;;  %p2235_p1 = scmp.lt.u32.totalorder %s2231_s23, %s2886_s4 }
   0x8   :  { %p2237_p2 = pnand %p2235_p1, %p2232_p0 }
   0xa   :  { %2240 = shalt.err (!%p2237_p2)
}
   0xb   :  { %s2241_s28 = scalar_lea.vmem %s44_s18, 256  ;;  %p2246_p4 = scmp.lt.s32.totalorder %s44_s18, %s44_s18 }
   0xc   :  { %p2242_p3 = scmp.ne.s32.totalorder %s44_s18, %s2241_s28  ;;  %p2247_p5 = scmp.lt.s32.totalorder %s2241_s28, %s2241_s28 }
   0xe   :  { %p2248_p6 = por %p2247_p5, %p2246_p4 }
  0x10   :  { %p2249_p7 = pnand %p2248_p6, %p2242_p3 }
  0x12   :  { %2252 = shalt.err (!%p2249_p7)
}
  0x13   :  { %s2373_s29 = smov 64   ;;  %s2374_s30 = smov 4  }
  0x14   :  { %49 = dma.hbm_to_vmem [thread:$0]  %s2886_s4, 256, %s44_s18, [#allocation8], %s2373_s29, %s2373_s29, %s2374_s30  }
  0x15   :  { %s2253_s16 = scalar_lea.hbm %s2889_s7, 256 }
  0x16   :  { %p2254_p8 = scmp.ne.s32.totalorder %s2889_s7, %s2253_s16  ;;  %p2257_p9 = scmp.lt.u32.totalorder %s2253_s16, %s2889_s7 }
  0x18   :  { %p2259_p10 = pnand %p2257_p9, %p2254_p8 }
  0x1a   :  { %2262 = shalt.err (!%p2259_p10)
}
  0x1b   :  { %s2263_s23 = scalar_lea.vmem %s2445_s20, 256  ;;  %p2268_p12 = scmp.lt.s32.totalorder %s2445_s20, %s2445_s20 }
  0x1c   :  { %p2264_p11 = scmp.ne.s32.totalorder %s2445_s20, %s2263_s23  ;;  %p2269_p13 = scmp.lt.s32.totalorder %s2263_s23, %s2263_s23 }
  0x1e   :  { %p2270_p0 = por %p2269_p13, %p2268_p12 }
  0x20   :  { %p2271_p1 = pnand %p2270_p0, %p2264_p11 }
  0x22   :  { %2274 = shalt.err (!%p2271_p1)
}
  0x23   :  { %75 = dma.hbm_to_vmem [thread:$0]  %s2889_s7, 256, %s2445_s20, [#allocation11], %s2373_s29, %s2373_s29, %s2374_s30  }
  0x24   :  { %s2375_s24 = smov [#allocation4]   ;;  %s2376_s26 = smov [#allocation9]  }
  0x25   :  { %s29_s25 = sshll.u32 %s2375_s24, 4  ;;  %s55_s27 = sshll.u32 %s2376_s26, 4  ;;  %s30_s25 = int_to_ptr.vmem [resolvable:$true] %s29_s25  ;;  %s2482_s27 = int_to_ptr.vmem [resolvable:$true] %s55_s27 }
  0x26   :  { %s2275_s13 = scalar_lea.hbm %s2884_s2, 256 }
  0x27   :  { %p2276_p2 = scmp.ne.s32.totalorder %s2884_s2, %s2275_s13  ;;  %p2279_p3 = scmp.lt.u32.totalorder %s2275_s13, %s2884_s2 }
  0x29   :  { %p2281_p4 = pnand %p2279_p3, %p2276_p2 }
  0x2b   :  { %2284 = shalt.err (!%p2281_p4)
}
  0x2c   :  { %s2285_s7 = scalar_lea.vmem %s30_s25, 256  ;;  %p2290_p6 = scmp.lt.s32.totalorder %s30_s25, %s30_s25 }
  0x2d   :  { %p2286_p5 = scmp.ne.s32.totalorder %s30_s25, %s2285_s7  ;;  %p2291_p7 = scmp.lt.s32.totalorder %s2285_s7, %s2285_s7 }
  0x2f   :  { %p2292_p8 = por %p2291_p7, %p2290_p6 }
  0x31   :  { %p2293_p9 = pnand %p2292_p8, %p2286_p5 }
  0x33   :  { %2296 = shalt.err (!%p2293_p9)
}
  0x34   :  { %35 = dma.hbm_to_vmem [thread:$0]  %s2884_s2, 256, %s30_s25, [#allocation5], %s2373_s29, %s2373_s29, %s2374_s30  }
  0x35   :  { %s2297_s23 = scalar_lea.hbm %s2887_s5, 256 }
  0x36   :  { %p2298_p10 = scmp.ne.s32.totalorder %s2887_s5, %s2297_s23  ;;  %p2301_p11 = scmp.lt.u32.totalorder %s2297_s23, %s2887_s5 }
  0x38   :  { %p2303_p12 = pnand %p2301_p11, %p2298_p10 }
  0x3a   :  { %2306 = shalt.err (!%p2303_p12)
}
  0x3b   :  { %s2307_s28 = scalar_lea.vmem %s2482_s27, 256  ;;  %p2312_p0 = scmp.lt.s32.totalorder %s2482_s27, %s2482_s27 }
  0x3c   :  { %p2308_p13 = scmp.ne.s32.totalorder %s2482_s27, %s2307_s28  ;;  %p2313_p1 = scmp.lt.s32.totalorder %s2307_s28, %s2307_s28 }
  0x3e   :  { %p2314_p2 = por %p2313_p1, %p2312_p0 }
  0x40   :  { %p2315_p3 = pnand %p2314_p2, %p2308_p13 }
  0x42   :  { %2318 = shalt.err (!%p2315_p3)
}
  0x43   :  { %61 = dma.hbm_to_vmem [thread:$0]  %s2887_s5, 256, %s2482_s27, [#allocation8], %s2373_s29, %s2373_s29, %s2374_s30  }
  0x44   :  { %s2377_s12 = smov [#allocation12]   ;;  %s2319_s16 = scalar_lea.hbm %s2890_s8, 16 }
  0x45   :  { %s82_s13 = sshll.u32 %s2377_s12, 4  ;;  %p2320_p4 = scmp.ne.s32.totalorder %s2890_s8, %s2319_s16  ;;  %s83_s13 = int_to_ptr.vmem [resolvable:$true] %s82_s13 }
  0x46   :  { %p2323_p5 = scmp.lt.u32.totalorder %s2319_s16, %s2890_s8 }
  0x48   :  { %p2325_p6 = pnand %p2323_p5, %p2320_p4 }
  0x4a   :  { %2328 = shalt.err (!%p2325_p6)
}
  0x4b   :  { %s2329_s21 = scalar_lea.vmem %s83_s13, 16  ;;  %s2333_s5 = scalar_lea.vmem %s83_s13, 32 }
  0x4c   :  { %p2330_p7 = scmp.ne.s32.totalorder %s83_s13, %s2329_s21  ;;  %p2334_p8 = scmp.lt.s32.totalorder %s83_s13, %s83_s13 }
  0x4d   :  { %p2335_p9 = scmp.lt.s32.totalorder %s2333_s5, %s2329_s21 }
  0x4f   :  { %p2336_p10 = por %p2335_p9, %p2334_p8 }
  0x51   :  { %p2337_p11 = pnand %p2336_p10, %p2330_p7 }
  0x53   :  { %2340 = shalt.err (!%p2337_p11)
}
  0x54   :  { %85 = dma.hbm_to_vmem [thread:$0]  %s2890_s8, 16, %s83_s13, [#allocation11]  }
  0x55   :  { %2363 = dma.done.wait [#allocation5], 256  }
  0x56   :  { %2364 = vsyncadd [#allocation5], 4294967040 }
  0x57   :  { %2365 = dma.done.wait [#allocation8], 512  }
  0x58   :  { %2366 = vsyncadd [#allocation8], 4294966784 }
  0x59   :  { %2367 = dma.done.wait [#allocation11], 272  }
  0x5a   :  { %2368 = vsyncadd [#allocation11], 4294967024  ;;  %v2378_v0 = vmov 0.0   ;;  %vm2379_vm0 = vmmov 0   ;;  %v2082_v1 = vld [vmem:[%s2883_s1] sm:$0xff]   ;;  %vm153_vm1 = vcmask 130048  }
  0x5b   :  { %1924 = vmatprep.subr.bf16.mxu1 %v2378_v0  ;;  %1928 = vmatprep.mubr.msk.bf16.mxu1 %vm2379_vm0, %v2378_v0  ;;  %v2083_v2 = vld [vmem:[%s2882_s0] sm:$0xff]   ;;  %v2084_v3 = vld [vmem:[%s2882_s0 + $0x8] sm:$0xff]   ;;  %v2544_v4 = vld [vmem:[#allocation4] sm:$0xff]   ;;  %v2380_v8 = vmov 0   ;;  %vm317_vm2 = vcmask 257024   ;;  %vm243_vm3 = vcmask 261120  }
  0x5c   :  { %1890 = vmatprep.subr.bf16.mxu0 %v2082_v1  ;;  %1892 = vmatprep.mubr.msk.bf16.mxu0 %vm153_vm1, %v2083_v2  ;;  %v2086_v5 = vld [vmem:[%s2882_s0 + $0x10] sm:$0xff]   ;;  %v2552_v6 = vld [vmem:[#allocation4 + $0x8] sm:$0xff]   ;;  %v1755_v9 = vld [vmem:[%s2885_s3] ss:$0 sm:$0xff]  ;;  %s2381_s3 = smov 32   ;;  %vm393_vm4 = vcmask 261124  }
  0x5d   :  { %1891 = vmatpush3.bf16.msra.mxu0 %v2082_v1  ;;  %1925 = vmatpush3.bf16.msra.mxu1 %v2544_v4  ;;  %v2087_v7 = vld [vmem:[%s2882_s0 + $0x18] sm:$0xff]   ;;  %s2382_s24 = smov [#allocation13]  }
  0x5e   :  { %1900 = vmatprep.subr.bf16.mxu0 %v2378_v0  ;;  %1926 = vmatprep.subr.bf16.mxu1 %v2378_v0  ;;  %s1741_s26 = sshll.u32 %s2382_s24, 4  ;;  %s1742_s26 = int_to_ptr.vmem [resolvable:$true] %s1741_s26 }
  0x5f   :  { %p2346_p13 = scmp.lt.s32.totalorder %s1742_s26, %s1742_s26 }
  0x60   :  { %1893 = vmatmul.mubr.msk.bf16.vlgmr.msra.gmra.mrb[0].mxu0 %vm153_vm1, %v2084_v3 }
  0x61   :  { %1901 = vmatpush3.bf16.msra.mxu0 %v2544_v4  ;;  %1896 = vmatprep.mubr.msk.bf16.mxu0 %vm153_vm1, %v2086_v5 }
  0x62   :  { %1902 = vmatprep.subr.bf16.mxu0 %v2378_v0  ;;  %1927 = vmatpush3.bf16.msra.mxu1 %v2552_v6 }
  0x63   :  { %1940 = vmatprep.subr.bf16.mxu1 %v2378_v0 }
  0x65   :  { %1903 = vmatpush3.bf16.msra.mxu0 %v2552_v6 }
  0x66   :  { %1908 = vmatprep.subr.bf16.mxu0 %v2378_v0 }
  0x68   :  { %1897 = vmatmul.mubr.msk.bf16.gmra.mrb[4].mxu0 %vm153_vm1, %v2087_v7 }
  0x69   :  { %1904 = vmatprep.mubr.msk.bf16.mxu0 %vm2379_vm0, %v2378_v0 }
  0x70   :  { %1905 = vmatmul.mubr.bf16.vlgmr.msra.gmra.mrb[8].mxu0 %v2380_v8 }
  0x71   :  { %1909 = vmatpush3.bf16.msra.mxu0 %v2544_v4  ;;  %1912 = vmatprep.mubr.msk.bf16.mxu0 %vm2379_vm0, %v2378_v0 }
  0x72   :  { %1910 = vmatprep.subr.bf16.mxu0 %v2378_v0 }
  0x75   :  { %1911 = vmatpush3.bf16.msra.mxu0 %v2552_v6 }
  0x76   :  { %1916 = vmatprep.subr.bf16.mxu0 %v2378_v0 }
 0x133   :  { %v1894_v10 = vpop.f32.mrb[0].mxu0 }
 0x134   :  { %v2578_v11 = vadd.f32 %v1894_v10, %v1755_v9  ;;  %v200_v12 = vpop.f32.mrb[1].mxu0 }
 0x135   :  { %v1895_v13 = vpop.f32.mrb[2].mxu0  ;;  %v201_v25 = vadd.f32 %v1755_v9, %v200_v12 }
 0x136   :  { %v2580_v14 = vadd.f32 %v1895_v13, %v1755_v9  ;;  %v203_v15 = vpop.f32.mrb[3].mxu0 }
 0x137   :  { %v204_v16 = vadd.f32 %v1755_v9, %v203_v15 }
 0x13b   :  { %v1898_v17 = vpop.f32.mrb[4].mxu0 }
 0x13c   :  { %v2582_v18 = vadd.f32 %v1898_v17, %v1755_v9  ;;  %v216_v19 = vpop.f32.mrb[5].mxu0 }
 0x13d   :  { %v2584_v20 = vadd.f32 %v1755_v9, %v216_v19  ;;  %v1899_v21 = vpop.f32.mrb[6].mxu0 }
 0x13e   :  { %v2586_v22 = vadd.f32 %v1899_v21, %v1755_v9  ;;  %v219_v23 = vpop.f32.mrb[7].mxu0 }
 0x13f   :  { %v2588_v24 = vadd.f32 %v1755_v9, %v219_v23 }
 0x143   :  { %v281_v26 = vpop.f32.mrb[8].mxu0 }
 0x144   :  { %v287_v27 = vadd.f32 %v281_v26, %v201_v25  ;;  %v1906_v28 = vpop.f32.mrb[9].mxu0 }
 0x145   :  { %v284_v29 = vpop.f32.mrb[10].mxu0 }
 0x146   :  { %2103 = vtanh.f32 %v287_v27  ;;  %v1907_v30 = vpop.f32.mrb[11].mxu0  ;;  %v1767_v32 = vmul.f32 -1.442695, %v287_v27 }
 0x148   :  { %2105 = vpow2.f32 %v1767_v32 }
 0x150   :  { %v2104_v31 = vpop.eup %2103 }
 0x151   :  { %297 = vrot.lane.b32.xlu0 %v2104_v31, %s2381_s3 }
 0x152   :  { %v2106_v33 = vpop.eup %2105 }
 0x153   :  { %v291_v34 = vadd.f32 1.0, %v2106_v33 }
 0x155   :  { %2107 = vrcp.f32 %v291_v34 }
 0x15f   :  { %v2108_v35 = vpop.eup %2107 }
 0x160   :  { %v295_v38 = vmul.f32 0.0, %v2108_v35 }
 0x1c3   :  { %v298_v36 = vpop.permute.xlu0 %297 }
 0x1c4   :  { %v300_v37 = vmul.f32 %v2108_v35, %v298_v36 }
 0x1c6   :  { %302 = vrot.lane.b32.xlu0 %v300_v37, %s2381_s3 }
 0x238   :  { %v303_v39 = vpop.permute.xlu0 %302 }
 0x239   :  { %v305_v40 = vadd.f32 %v303_v39, %v295_v38 }
 0x23b   :  { %2109 = vtanh.f32 %v305_v40 }
 0x245   :  { %v2110_v41 = vpop.eup %2109 }
 0x246   :  { %308 = vrot.lane.b32.xlu1 %v2110_v41, %s2381_s3 }
 0x2b8   :  { %v309_v42 = vpop.permute.xlu1 %308 }
 0x2b9   :  { %v311_v43 = vmul.f32 %v2108_v35, %v309_v42 }
 0x2bb   :  { %v312_v44 = vpack.c.bf16 %v311_v43, %v311_v43 }
 0x2bd   :  { %314 = vrot.lane.b32.xlu1 %v312_v44, %s2373_s29 }
 0x32f   :  { %v315_v45 = vpop.permute.xlu1 %314 }
 0x330   :  { %318 = vst.msk [vmem:[#allocation2] sm:$0xf] %vm317_vm2, %v315_v45  ;;  %1913 = vmatmul.mubr.msk.bf16.vlgmr.msra.gmra.mrb[12].mxu0 %vm243_vm3, %v315_v45 }
 0x331   :  { %1917 = vmatpush3.bf16.msra.mxu0 %v2544_v4  ;;  %1920 = vmatprep.mubr.msk.bf16.mxu0 %vm2379_vm0, %v2378_v0 }
 0x332   :  { %1918 = vmatprep.subr.bf16.mxu0 %v2378_v0 }
 0x335   :  { %1919 = vmatpush3.bf16.msra.mxu0 %v2552_v6 }
 0x336   :  { %1932 = vmatprep.subr.bf16.mxu0 %v2378_v0 }
 0x403   :  { %v356_v46 = vpop.f32.mrb[12].mxu0 }
 0x404   :  { %v362_v47 = vadd.f32 %v356_v46, %v204_v16  ;;  %v1914_v48 = vpop.f32.mrb[13].mxu0 }
 0x405   :  { %v359_v49 = vpop.f32.mrb[14].mxu0 }
 0x406   :  { %2111 = vtanh.f32 %v362_v47  ;;  %v1915_v50 = vpop.f32.mrb[15].mxu0  ;;  %v1769_v52 = vmul.f32 -1.442695, %v362_v47 }
 0x408   :  { %2113 = vpow2.f32 %v1769_v52 }
 0x410   :  { %v2112_v51 = vpop.eup %2111 }
 0x411   :  { %372 = vrot.lane.b32.xlu0 %v2112_v51, %s2381_s3 }
 0x412   :  { %v2114_v53 = vpop.eup %2113 }
 0x413   :  { %v366_v54 = vadd.f32 1.0, %v2114_v53 }
 0x415   :  { %2115 = vrcp.f32 %v366_v54 }
 0x41f   :  { %v2116_v55 = vpop.eup %2115 }
 0x420   :  { %v370_v58 = vmul.f32 %v2116_v55, %v305_v40 }
 0x483   :  { %v373_v56 = vpop.permute.xlu0 %372 }
 0x484   :  { %v375_v57 = vmul.f32 %v2116_v55, %v373_v56 }
 0x486   :  { %377 = vrot.lane.b32.xlu1 %v375_v57, %s2381_s3 }
 0x4f8   :  { %v378_v59 = vpop.permute.xlu1 %377 }
 0x4f9   :  { %v380_v60 = vadd.f32 %v378_v59, %v370_v58 }
 0x4fb   :  { %2117 = vtanh.f32 %v380_v60 }
 0x505   :  { %v2118_v61 = vpop.eup %2117 }
 0x506   :  { %383 = vrot.lane.b32.xlu0 %v2118_v61, %s2381_s3 }
 0x578   :  { %v384_v62 = vpop.permute.xlu0 %383 }
 0x579   :  { %v386_v63 = vmul.f32 %v2116_v55, %v384_v62 }
 0x57b   :  { %v2605_v1 = vpack.c.bf16 %v386_v63, %v386_v63 }
 0x57d   :  { %395 = vrot.lane.b32.xlu1 %v2605_v1, %s2373_s29 }
 0x5ef   :  { %v396_v2 = vpop.permute.xlu1 %395 }
 0x5f0   :  { %1921 = vmatmul.mubr.msk.bf16.vlgmr.msra.gmra.mrb[16].mxu0 %vm243_vm3, %v396_v2 }
 0x5f1   :  { %1933 = vmatpush3.bf16.msra.mxu0 %v2544_v4  ;;  %1936 = vmatprep.mubr.msk.bf16.mxu0 %vm2379_vm0, %v2378_v0 }
 0x5f2   :  { %1934 = vmatprep.subr.bf16.mxu0 %v2378_v0 }
 0x5f5   :  { %1935 = vmatpush3.bf16.msra.mxu0 %v2552_v6 }
 0x5f6   :  { %1948 = vmatprep.subr.bf16.mxu0 %v2378_v0 }
 0x6c3   :  { %v434_v3 = vpop.f32.mrb[16].mxu0 }
 0x6c4   :  { %v440_v5 = vadd.f32 %v434_v3, %v2578_v11  ;;  %v1922_v7 = vpop.f32.mrb[17].mxu0 }
 0x6c5   :  { %v437_v9 = vpop.f32.mrb[18].mxu0 }
 0x6c6   :  { %2119 = vtanh.f32 %v440_v5  ;;  %v1923_v10 = vpop.f32.mrb[19].mxu0  ;;  %v1771_v13 = vmul.f32 -1.442695, %v440_v5 }
 0x6c8   :  { %2121 = vpow2.f32 %v1771_v13 }
 0x6d0   :  { %v2120_v12 = vpop.eup %2119 }
 0x6d1   :  { %450 = vrot.lane.b32.xlu0 %v2120_v12, %s2381_s3 }
 0x6d2   :  { %v2122_v15 = vpop.eup %2121 }
 0x6d3   :  { %v444_v16 = vadd.f32 1.0, %v2122_v15 }
 0x6d5   :  { %2123 = vrcp.f32 %v444_v16 }
 0x6df   :  { %v2124_v17 = vpop.eup %2123 }
 0x6e0   :  { %v448_v23 = vmul.f32 %v2124_v17, %v380_v60 }
 0x743   :  { %v451_v19 = vpop.permute.xlu0 %450 }
 0x744   :  { %v453_v21 = vmul.f32 %v2124_v17, %v451_v19 }
 0x746   :  { %455 = vrot.lane.b32.xlu1 %v453_v21, %s2381_s3 }
 0x7b8   :  { %v456_v25 = vpop.permute.xlu1 %455 }
 0x7b9   :  { %v458_v11 = vadd.f32 %v456_v25, %v448_v23 }
 0x7bb   :  { %2125 = vtanh.f32 %v458_v11 }
 0x7c5   :  { %v2126_v26 = vpop.eup %2125 }
 0x7c6   :  { %461 = vrot.lane.b32.xlu0 %v2126_v26, %s2381_s3 }
 0x838   :  { %v462_v27 = vpop.permute.xlu0 %461 }
 0x839   :  { %v464_v28 = vmul.f32 %v2124_v17, %v462_v27 }
 0x83b   :  { %v465_v29 = vpack.c.bf16 %v464_v28, %v464_v28 }
 0x83d   :  { %467 = vrot.lane.b32.xlu1 %v465_v29, %s2373_s29 }
 0x8af   :  { %v468_v30 = vpop.permute.xlu1 %467 }
 0x8b0   :  { %470 = vst.msk [vmem:[#allocation2 + $0x8] sm:$0xf] %vm317_vm2, %v468_v30  ;;  %1929 = vmatmul.mubr.msk.bf16.vlgmr.msra.gmra.mrb[0].mxu1 %vm243_vm3, %v468_v30 }
 0x8b1   :  { %1941 = vmatpush3.bf16.msra.mxu1 %v2544_v4  ;;  %1944 = vmatprep.mubr.msk.bf16.mxu1 %vm2379_vm0, %v2378_v0 }
 0x8b2   :  { %1942 = vmatprep.subr.bf16.mxu1 %v2378_v0 }
 0x8b5   :  { %1943 = vmatpush3.bf16.msra.mxu1 %v2552_v6 }
 0x8b6   :  { %1956 = vmatprep.subr.bf16.mxu1 %v2378_v0 }
 0x983   :  { %v508_v31 = vpop.f32.mrb[0].mxu1 }
 0x984   :  { %v514_v32 = vadd.f32 %v508_v31, %v2580_v14  ;;  %v1930_v33 = vpop.f32.mrb[1].mxu1 }
 0x985   :  { %v511_v34 = vpop.f32.mrb[2].mxu1 }
 0x986   :  { %2127 = vtanh.f32 %v514_v32  ;;  %v1931_v35 = vpop.f32.mrb[3].mxu1  ;;  %v1773_v37 = vmul.f32 -1.442695, %v514_v32 }
 0x988   :  { %2129 = vpow2.f32 %v1773_v37 }
 0x990   :  { %v2128_v36 = vpop.eup %2127 }
 0x991   :  { %524 = vrot.lane.b32.xlu0 %v2128_v36, %s2381_s3 }
 0x992   :  { %v2130_v38 = vpop.eup %2129 }
 0x993   :  { %v518_v39 = vadd.f32 1.0, %v2130_v38 }
 0x995   :  { %2131 = vrcp.f32 %v518_v39 }
 0x99f   :  { %v2132_v40 = vpop.eup %2131 }
 0x9a0   :  { %v522_v43 = vmul.f32 %v2132_v40, %v458_v11 }
 0xa03   :  { %v525_v41 = vpop.permute.xlu0 %524 }
 0xa04   :  { %v527_v42 = vmul.f32 %v2132_v40, %v525_v41 }
 0xa06   :  { %529 = vrot.lane.b32.xlu1 %v527_v42, %s2381_s3 }
 0xa78   :  { %v530_v44 = vpop.permute.xlu1 %529 }
 0xa79   :  { %v532_v14 = vadd.f32 %v530_v44, %v522_v43  ;;  %v389_v44 = vrot.slane %v2605_v1, 4 }
 0xa7b   :  { %2133 = vtanh.f32 %v532_v14 }
 0xa85   :  { %v2134_v45 = vpop.eup %2133 }
 0xa86   :  { %535 = vrot.lane.b32.xlu0 %v2134_v45, %s2381_s3 }
 0xaf8   :  { %v536_v46 = vpop.permute.xlu0 %535 }
 0xaf9   :  { %v538_v47 = vmul.f32 %v2132_v40, %v536_v46  ;;  %v2089_v46 = vld [vmem:[#allocation7] sm:$0xff]  }
 0xafb   :  { %v2633_v48 = vpack.c.bf16 %v538_v47, %v538_v47 }
 0xafd   :  { %546 = vrot.lane.b32.xlu1 %v2633_v48, %s2373_s29 }
 0xb6f   :  { %v547_v49 = vpop.permute.xlu1 %546 }
 0xb70   :  { %1937 = vmatmul.mubr.msk.bf16.vlgmr.msra.gmra.mrb[20].mxu0 %vm243_vm3, %v547_v49  ;;  %v2090_v49 = vld [vmem:[#allocation7 + $0x8] sm:$0xff]  }
 0xb71   :  { %1949 = vmatpush3.bf16.msra.mxu0 %v2544_v4  ;;  %1952 = vmatprep.mubr.msk.bf16.mxu0 %vm2379_vm0, %v2378_v0 }
 0xb72   :  { %1950 = vmatprep.subr.bf16.mxu0 %v2378_v0 }
 0xb75   :  { %1951 = vmatpush3.bf16.msra.mxu0 %v2552_v6 }
 0xb76   :  { %1964 = vmatprep.subr.bf16.mxu0 %v2089_v46 }
 0xc43   :  { %v585_v50 = vpop.f32.mrb[20].mxu0 }
 0xc44   :  { %v591_v51 = vadd.f32 %v585_v50, %v2584_v20  ;;  %v1938_v52 = vpop.f32.mrb[21].mxu0 }
 0xc45   :  { %v588_v53 = vpop.f32.mrb[22].mxu0 }
 0xc46   :  { %2135 = vtanh.f32 %v591_v51  ;;  %v1939_v54 = vpop.f32.mrb[23].mxu0  ;;  %v1775_v56 = vmul.f32 -1.442695, %v591_v51  ;;  %v541_v51 = vrot.slane %v2633_v48, 4  ;;  %v2686_v48 = vld [vmem:[#allocation9 + $0x8] sm:$0xff]  }
 0xc48   :  { %2137 = vpow2.f32 %v1775_v56 }
 0xc50   :  { %v2136_v55 = vpop.eup %2135 }
 0xc51   :  { %601 = vrot.lane.b32.xlu0 %v2136_v55, %s2381_s3 }
 0xc52   :  { %v2138_v57 = vpop.eup %2137 }
 0xc53   :  { %v595_v58 = vadd.f32 1.0, %v2138_v57  ;;  %v2681_v57 = vld [vmem:[#allocation9] sm:$0xff]  }
 0xc55   :  { %2139 = vrcp.f32 %v595_v58 }
 0xc5f   :  { %v2140_v59 = vpop.eup %2139 }
 0xc60   :  { %v599_v62 = vmul.f32 %v2140_v59, %v532_v14 }
 0xcc3   :  { %v602_v60 = vpop.permute.xlu0 %601 }
 0xcc4   :  { %v604_v61 = vmul.f32 %v2140_v59, %v602_v60 }
 0xcc6   :  { %606 = vrot.lane.b32.xlu1 %v604_v61, %s2381_s3 }
 0xd38   :  { %v607_v63 = vpop.permute.xlu1 %606 }
 0xd39   :  { %v609_v20 = vadd.f32 %v607_v63, %v599_v62 }
 0xd3b   :  { %2141 = vtanh.f32 %v609_v20 }
 0xd45   :  { %v2142_v2 = vpop.eup %2141 }
 0xd46   :  { %612 = vrot.lane.b32.xlu0 %v2142_v2, %s2381_s3 }
 0xdb8   :  { %v613_v3 = vpop.permute.xlu0 %612 }
 0xdb9   :  { %v615_v5 = vmul.f32 %v2140_v59, %v613_v3 }
 0xdbb   :  { %v616_v7 = vpack.c.bf16 %v615_v5, %v615_v5  ;;  %v2715_v5 = vld [vmem:[%s2888_s6] ss:$0 sm:$0xff] }
 0xdbd   :  { %618 = vrot.lane.b32.xlu1 %v616_v7, %s2373_s29 }
 0xe2f   :  { %v619_v9 = vpop.permute.xlu1 %618 }
 0xe30   :  { %621 = vst.msk [vmem:[#allocation2 + $0x10] sm:$0xf] %vm317_vm2, %v619_v9  ;;  %1945 = vmatmul.mubr.msk.bf16.vlgmr.msra.gmra.mrb[4].mxu1 %vm243_vm3, %v619_v9 }
 0xe31   :  { %1957 = vmatpush3.bf16.msra.mxu1 %v2544_v4  ;;  %1960 = vmatprep.mubr.msk.bf16.mxu1 %vm2379_vm0, %v2378_v0 }
 0xe32   :  { %1958 = vmatprep.subr.bf16.mxu1 %v2378_v0 }
 0xe35   :  { %1959 = vmatpush3.bf16.msra.mxu1 %v2552_v6 }
 0xe36   :  { %1976 = vmatprep.subr.bf16.mxu1 %v2378_v0 }
 0xf03   :  { %v659_v10 = vpop.f32.mrb[4].mxu1 }
 0xf04   :  { %v665_v12 = vadd.f32 %v659_v10, %v2588_v24  ;;  %v1946_v13 = vpop.f32.mrb[5].mxu1 }
 0xf05   :  { %v662_v15 = vpop.f32.mrb[6].mxu1 }
 0xf06   :  { %2143 = vtanh.f32 %v665_v12  ;;  %v1947_v16 = vpop.f32.mrb[7].mxu1  ;;  %v1777_v4 = vmul.f32 -1.442695, %v665_v12 }
 0xf08   :  { %2145 = vpow2.f32 %v1777_v4 }
 0xf10   :  { %v2144_v17 = vpop.eup %2143 }
 0xf11   :  { %675 = vrot.lane.b32.xlu0 %v2144_v17, %s2381_s3 }
 0xf12   :  { %v2146_v19 = vpop.eup %2145 }
 0xf13   :  { %v669_v21 = vadd.f32 1.0, %v2146_v19 }
 0xf15   :  { %2147 = vrcp.f32 %v669_v21 }
 0xf1f   :  { %v2148_v23 = vpop.eup %2147 }
 0xf20   :  { %v673_v11 = vmul.f32 %v2148_v23, %v609_v20 }
 0xf83   :  { %v676_v25 = vpop.permute.xlu0 %675 }
 0xf84   :  { %v678_v6 = vmul.f32 %v2148_v23, %v676_v25 }
 0xf86   :  { %680 = vrot.lane.b32.xlu1 %v678_v6, %s2381_s3 }
 0xff8   :  { %v681_v26 = vpop.permute.xlu1 %680 }
 0xff9   :  { %v683_v24 = vadd.f32 %v681_v26, %v673_v11 }
 0xffb   :  { %2149 = vtanh.f32 %v683_v24 }
0x1005   :  { %v2150_v27 = vpop.eup %2149 }
0x1006   :  { %686 = vrot.lane.b32.xlu0 %v2150_v27, %s2381_s3 }
0x1078   :  { %v687_v28 = vpop.permute.xlu0 %686 }
0x1079   :  { %v689_v29 = vmul.f32 %v2148_v23, %v687_v28 }
0x107b   :  { %v2660_v30 = vpack.c.bf16 %v689_v29, %v689_v29 }
0x107d   :  { %697 = vrot.lane.b32.xlu1 %v2660_v30, %s2373_s29 }
0x10ef   :  { %v698_v31 = vpop.permute.xlu1 %697 }
0x10f0   :  { %1953 = vmatmul.mubr.msk.bf16.vlgmr.msra.gmra.mrb[24].mxu0 %vm243_vm3, %v698_v31 }
0x10f1   :  { %1965 = vmatpush3.bf16.msra.mxu0 %v2089_v46 }
0x10f2   :  { %1966 = vmatprep.subr.bf16.mxu0 %v2090_v49 }
0x10f5   :  { %1967 = vmatpush3.bf16.msra.mxu0 %v2090_v49 }
0x10f6   :  { %1992 = vmatprep.subr.bf16.mxu0 %v2378_v0 }
0x11c3   :  { %v736_v32 = vpop.f32.mrb[24].mxu0 }
0x11c4   :  { %v742_v33 = vadd.f32 %v736_v32, %v2582_v18  ;;  %v1954_v34 = vpop.f32.mrb[25].mxu0 }
0x11c5   :  { %v739_v35 = vpop.f32.mrb[26].mxu0 }
0x11c6   :  { %2151 = vtanh.f32 %v742_v33  ;;  %v1955_v36 = vpop.f32.mrb[27].mxu0  ;;  %v1779_v38 = vmul.f32 -1.442695, %v742_v33 }
0x11c8   :  { %2153 = vpow2.f32 %v1779_v38 }
0x11d0   :  { %v2152_v37 = vpop.eup %2151 }
0x11d1   :  { %752 = vrot.lane.b32.xlu0 %v2152_v37, %s2381_s3 }
0x11d2   :  { %v2154_v39 = vpop.eup %2153 }
0x11d3   :  { %v746_v40 = vadd.f32 1.0, %v2154_v39 }
0x11d5   :  { %2155 = vrcp.f32 %v746_v40 }
0x11df   :  { %v2156_v41 = vpop.eup %2155 }
0x11e0   :  { %v750_v18 = vmul.f32 %v2156_v41, %v683_v24 }
0x1243   :  { %v753_v42 = vpop.permute.xlu0 %752 }
0x1244   :  { %v755_v43 = vmul.f32 %v2156_v41, %v753_v42  ;;  %v692_v42 = vrot.slane %v2660_v30, 4 }
0x1246   :  { %757 = vrot.lane.b32.xlu1 %v755_v43, %s2381_s3 }
0x124a   :  { %390 = vrot.lane.b32.xlu1 %v389_v44, %s2373_s29 }
0x12b8   :  { %v758_v14 = vpop.permute.xlu1 %757 }
0x12b9   :  { %v2670_v45 = vadd.f32 %v758_v14, %v750_v18 }
0x12bb   :  { %2157 = vtanh.f32 %v2670_v45 }
0x12bc   :  { %v391_v47 = vpop.permute.xlu1 %390 }
0x12bd   :  { %394 = vst.msk [vmem:[#allocation2] sm:$0xf0] %vm393_vm4, %v391_v47 }
0x12c4   :  { %v853_v1 = vld [vmem:[#allocation2] sm:$0xff] }
0x12c5   :  { %v2158_v50 = vpop.eup %2157  ;;  %1968 = vmatprep.mubr.msk.bf16.mxu0 %vm243_vm3, %v853_v1 }
0x12c6   :  { %763 = vrot.lane.b32.xlu0 %v2158_v50, %s2381_s3 }
0x12ca   :  { %542 = vrot.lane.b32.xlu0 %v541_v51, %s2373_s29 }
0x1338   :  { %v764_v52 = vpop.permute.xlu0 %763 }
0x1339   :  { %v766_v53 = vmul.f32 %v2156_v41, %v764_v52 }
0x133b   :  { %v767_v54 = vpack.c.bf16 %v766_v53, %v766_v53 }
0x133c   :  { %v543_v55 = vpop.permute.xlu0 %542 }
0x133d   :  { %545 = vst.msk [vmem:[#allocation2 + $0x8] sm:$0xf0] %vm393_vm4, %v543_v55  ;;  %769 = vrot.lane.b32.xlu1 %v767_v54, %s2373_s29 }
0x1344   :  { %v854_v56 = vld [vmem:[#allocation2 + $0x8] sm:$0xff] }
0x1345   :  { %1969 = vmatmul.mubr.msk.bf16.vlgmr.msra.gmra.mrb[28].mxu0 %vm243_vm3, %v854_v56 }
0x1346   :  { %1993 = vmatpush3.bf16.msra.mxu0 %v2681_v57 }
0x1347   :  { %1994 = vmatprep.subr.bf16.mxu0 %v2378_v0 }
0x134a   :  { %1995 = vmatpush3.bf16.msra.mxu0 %v2686_v48 }
0x134b   :  { %2008 = vmatprep.subr.bf16.mxu0 %v2378_v0 }
0x13af   :  { %v770_v58 = vpop.permute.xlu1 %769 }
0x13b0   :  { %772 = vst.msk [vmem:[#allocation2 + $0x18] sm:$0xf] %vm317_vm2, %v770_v58  ;;  %1961 = vmatmul.mubr.msk.bf16.vlgmr.msra.gmra.mrb[8].mxu1 %vm243_vm3, %v770_v58 }
0x13b1   :  { %1977 = vmatpush3.bf16.msra.mxu1 %v2681_v57  ;;  %1980 = vmatprep.mubr.msk.bf16.mxu1 %vm2379_vm0, %v2378_v0 }
0x13b2   :  { %1978 = vmatprep.subr.bf16.mxu1 %v2378_v0 }
0x13b5   :  { %1979 = vmatpush3.bf16.msra.mxu1 %v2686_v48 }
0x13b6   :  { %1984 = vmatprep.subr.bf16.mxu1 %v2378_v0 }
0x13b8   :  { %1981 = vmatmul.mubr.bf16.vlgmr.msra.gmra.mrb[12].mxu1 %v2380_v8 }
0x13b9   :  { %1985 = vmatpush3.bf16.msra.mxu1 %v2681_v57  ;;  %1988 = vmatprep.mubr.msk.bf16.mxu1 %vm2379_vm0, %v2378_v0 }
0x13ba   :  { %1986 = vmatprep.subr.bf16.mxu1 %v2378_v0 }
0x13bd   :  { %1987 = vmatpush3.bf16.msra.mxu1 %v2686_v48 }
0x13be   :  { %2000 = vmatprep.subr.bf16.mxu1 %v2378_v0 }
0x1418   :  { %v2705_v59 = vpop.f32.mrb[28].mxu0 }
0x1419   :  { %v930_v60 = vpop.f32.mrb[29].mxu0 }
0x141a   :  { %v2707_v61 = vpop.f32.mrb[30].mxu0  ;;  %v931_v7 = vadd.f32 %v2715_v5, %v930_v60 }
0x141b   :  { %v2709_v62 = vpop.f32.mrb[31].mxu0 }
0x141c   :  { %v934_v14 = vadd.f32 %v2715_v5, %v2709_v62 }
0x1483   :  { %v810_v63 = vpop.f32.mrb[8].mxu1 }
0x1484   :  { %v816_v8 = vadd.f32 %v810_v63, %v2586_v22  ;;  %v1962_v20 = vpop.f32.mrb[9].mxu1 }
0x1485   :  { %v813_v2 = vpop.f32.mrb[10].mxu1 }
0x1486   :  { %v1963_v3 = vpop.f32.mrb[11].mxu1  ;;  %v1781_v27 = vmul.f32 -1.442695, %v816_v8 }
0x148b   :  { %v1007_v9 = vpop.f32.mrb[12].mxu1 }
0x148c   :  { %v1013_v10 = vadd.f32 %v1007_v9, %v931_v7  ;;  %v1982_v12 = vpop.f32.mrb[13].mxu1 }
0x148d   :  { %v1010_v13 = vpop.f32.mrb[14].mxu1 }
0x148e   :  { %2159 = vtanh.f32 %v1013_v10  ;;  %v1983_v15 = vpop.f32.mrb[15].mxu1  ;;  %v1791_v22 = vmul.f32 -1.442695, %v1013_v10 }
0x1490   :  { %2161 = vpow2.f32 %v1791_v22 }
0x1498   :  { %v2160_v16 = vpop.eup %2159 }
0x1499   :  { %1023 = vrot.lane.b32.xlu0 %v2160_v16, %s2381_s3 }
0x149a   :  { %v2162_v17 = vpop.eup %2161 }
0x149b   :  { %v1017_v4 = vadd.f32 1.0, %v2162_v17  ;;  %v939_v17 = vadd.f32 %v2705_v59, %v2715_v5 }
0x149d   :  { %2163 = vrcp.f32 %v1017_v4 }
0x14a7   :  { %v2164_v19 = vpop.eup %2163 }
0x14a8   :  { %v1021_v25 = vmul.f32 0.0, %v2164_v19 }
0x150b   :  { %v1024_v21 = vpop.permute.xlu0 %1023 }
0x150c   :  { %v1026_v23 = vmul.f32 %v2164_v19, %v1024_v21 }
0x150e   :  { %1028 = vrot.lane.b32.xlu1 %v1026_v23, %s2381_s3 }
0x1580   :  { %v1029_v6 = vpop.permute.xlu1 %1028 }
0x1581   :  { %v1031_v11 = vadd.f32 %v1029_v6, %v1021_v25 }
0x1583   :  { %2165 = vtanh.f32 %v1031_v11 }
0x1584   :  { %2167 = vtanh.f32 %v816_v8 }
0x1585   :  { %2169 = vpow2.f32 %v1781_v27 }
0x158d   :  { %v2166_v26 = vpop.eup %2165 }
0x158e   :  { %1034 = vrot.lane.b32.xlu0 %v2166_v26, %s2381_s3  ;;  %v2168_v24 = vpop.eup %2167 }
0x158f   :  { %v2170_v28 = vpop.eup %2169 }
0x1590   :  { %v820_v29 = vadd.f32 1.0, %v2170_v28 }
0x1592   :  { %826 = vrot.lane.b32.xlu0 %v2168_v24, %s2381_s3  ;;  %2171 = vrcp.f32 %v820_v29 }
0x159c   :  { %v2172_v34 = vpop.eup %2171 }
0x159d   :  { %v824_v38 = vmul.f32 %v2172_v34, %v2670_v45 }
0x1600   :  { %v1035_v31 = vpop.permute.xlu0 %1034 }
0x1601   :  { %v1037_v32 = vmul.f32 %v2164_v19, %v1035_v31 }
0x1603   :  { %v1038_v33 = vpack.c.bf16 %v1037_v32, %v1037_v32 }
0x1604   :  { %v827_v35 = vpop.permute.xlu0 %826 }
0x1605   :  { %v829_v36 = vmul.f32 %v2172_v34, %v827_v35  ;;  %1040 = vrot.lane.b32.xlu1 %v1038_v33, %s2373_s29 }
0x1607   :  { %831 = vrot.lane.b32.xlu0 %v829_v36, %s2381_s3 }
0x1677   :  { %v1041_v37 = vpop.permute.xlu1 %1040 }
0x1678   :  { %1989 = vmatmul.mubr.msk.bf16.vlgmr.msra.gmra.mrb[16].mxu1 %vm243_vm3, %v1041_v37 }
0x1679   :  { %v832_v39 = vpop.permute.xlu0 %831  ;;  %2001 = vmatpush3.bf16.msra.mxu1 %v2681_v57  ;;  %2004 = vmatprep.mubr.msk.bf16.mxu1 %vm2379_vm0, %v2378_v0 }
0x167a   :  { %v834_v40 = vadd.f32 %v832_v39, %v824_v38  ;;  %2002 = vmatprep.subr.bf16.mxu1 %v2378_v0  ;;  %v942_v38 = vadd.f32 %v2707_v61, %v2715_v5 }
0x167c   :  { %2173 = vtanh.f32 %v834_v40 }
0x167d   :  { %2003 = vmatpush3.bf16.msra.mxu1 %v2686_v48 }
0x167e   :  { %2016 = vmatprep.subr.bf16.mxu1 %v2378_v0 }
0x1686   :  { %v2174_v41 = vpop.eup %2173 }
0x1687   :  { %837 = vrot.lane.b32.xlu0 %v2174_v41, %s2381_s3 }
0x168b   :  { %693 = vrot.lane.b32.xlu0 %v692_v42, %s2373_s29 }
0x16f9   :  { %v838_v43 = vpop.permute.xlu0 %837 }
0x16fa   :  { %v2741_v62 = vmul.f32 %v2172_v34, %v838_v43 }
0x16fc   :  { %v841_v63 = vpack.c.bf16 %v2741_v62, %v2741_v62 }
0x16fd   :  { %v694_v44 = vpop.permute.xlu0 %693 }
0x16fe   :  { %696 = vst.msk [vmem:[#allocation2 + $0x10] sm:$0xf0] %vm393_vm4, %v694_v44  ;;  %v843_v20 = vrot.slane %v841_v63, 4 }
0x1705   :  { %v855_v18 = vld [vmem:[#allocation2 + $0x10] sm:$0xff] }
0x1706   :  { %1972 = vmatprep.mubr.msk.bf16.mxu0 %vm243_vm3, %v855_v18 }
0x174b   :  { %v1079_v45 = vpop.f32.mrb[16].mxu1 }
0x174c   :  { %v1085_v46 = vadd.f32 %v1079_v45, %v934_v14  ;;  %v1990_v47 = vpop.f32.mrb[17].mxu1 }
0x174d   :  { %v1082_v49 = vpop.f32.mrb[18].mxu1 }
0x174e   :  { %2175 = vtanh.f32 %v1085_v46  ;;  %v1991_v1 = vpop.f32.mrb[19].mxu1  ;;  %v1793_v30 = vmul.f32 -1.442695, %v1085_v46 }
0x1750   :  { %2177 = vpow2.f32 %v1793_v30 }
0x1758   :  { %v2176_v50 = vpop.eup %2175 }
0x1759   :  { %1095 = vrot.lane.b32.xlu1 %v2176_v50, %s2381_s3 }
0x175a   :  { %v2178_v51 = vpop.eup %2177 }
0x175b   :  { %v1089_v52 = vadd.f32 1.0, %v2178_v51 }
0x175d   :  { %2179 = vrcp.f32 %v1089_v52 }
0x1767   :  { %v2180_v53 = vpop.eup %2179 }
0x1768   :  { %v1093_v56 = vmul.f32 %v2180_v53, %v1031_v11 }
0x17cb   :  { %v1096_v54 = vpop.permute.xlu1 %1095 }
0x17cc   :  { %v1098_v55 = vmul.f32 %v2180_v53, %v1096_v54 }
0x17ce   :  { %1100 = vrot.lane.b32.xlu1 %v1098_v55, %s2381_s3 }
0x1840   :  { %v1101_v58 = vpop.permute.xlu1 %1100 }
0x1841   :  { %v1103_v60 = vadd.f32 %v1101_v58, %v1093_v56 }
0x1843   :  { %2181 = vtanh.f32 %v1103_v60 }
0x184d   :  { %v2182_v8 = vpop.eup %2181 }
0x184e   :  { %1106 = vrot.lane.b32.xlu1 %v2182_v8, %s2381_s3 }
0x1852   :  { %844 = vrot.lane.b32.xlu1 %v843_v20, %s2373_s29 }
0x18c0   :  { %v1107_v2 = vpop.permute.xlu1 %1106 }
0x18c1   :  { %v1109_v3 = vmul.f32 %v2180_v53, %v1107_v2 }
0x18c3   :  { %v1110_v7 = vpack.c.bf16 %v1109_v3, %v1109_v3 }
0x18c4   :  { %v845_v9 = vpop.permute.xlu1 %844 }
0x18c5   :  { %847 = vst.msk [vmem:[#allocation2 + $0x18] sm:$0xf0] %vm393_vm4, %v845_v9  ;;  %1112 = vrot.lane.b32.xlu0 %v1110_v7, %s2373_s29 }
0x18cc   :  { %v856_v10 = vld [vmem:[#allocation2 + $0x18] sm:$0xff] }
0x18cd   :  { %1973 = vmatmul.mubr.msk.bf16.gmra.mrb[32].mxu0 %vm243_vm3, %v856_v10 }
0x18ce   :  { %1996 = vmatprep.mubr.msk.bf16.mxu0 %vm2379_vm0, %v2378_v0 }
0x1937   :  { %v1113_v12 = vpop.permute.xlu0 %1112 }
0x1938   :  { %1997 = vmatmul.mubr.msk.bf16.vlgmr.msra.gmra.mrb[36].mxu0 %vm243_vm3, %v1113_v12 }
0x1939   :  { %2009 = vmatpush3.bf16.msra.mxu0 %v2681_v57  ;;  %2012 = vmatprep.mubr.msk.bf16.mxu0 %vm2379_vm0, %v2378_v0 }
0x193a   :  { %2010 = vmatprep.subr.bf16.mxu0 %v2378_v0 }
0x193d   :  { %2011 = vmatpush3.bf16.msra.mxu0 %v2686_v48 }
0x193e   :  { %2024 = vmatprep.subr.bf16.mxu0 %v2378_v0 }
0x19a0   :  { %v2759_v13 = vpop.f32.mrb[32].mxu0 }
0x19a1   :  { %v2761_v15 = vpop.f32.mrb[33].mxu0 }
0x19a2   :  { %v2763_v16 = vpop.f32.mrb[34].mxu0  ;;  %v947_v55 = vadd.f32 %v2715_v5, %v2761_v15 }
0x19a3   :  { %v2765_v22 = vpop.f32.mrb[35].mxu0 }
0x1a0b   :  { %v1151_v4 = vpop.f32.mrb[36].mxu0 }
0x1a0c   :  { %v1157_v19 = vadd.f32 %v1151_v4, %v939_v17  ;;  %v1998_v21 = vpop.f32.mrb[37].mxu0 }
0x1a0d   :  { %v1154_v23 = vpop.f32.mrb[38].mxu0 }
0x1a0e   :  { %2183 = vtanh.f32 %v1157_v19  ;;  %v1999_v25 = vpop.f32.mrb[39].mxu0  ;;  %v1795_v11 = vmul.f32 -1.442695, %v1157_v19 }
0x1a10   :  { %2185 = vpow2.f32 %v1795_v11  ;;  %v950_v11 = vadd.f32 %v2715_v5, %v2765_v22 }
0x1a18   :  { %v2184_v6 = vpop.eup %2183 }
0x1a19   :  { %1167 = vrot.lane.b32.xlu1 %v2184_v6, %s2381_s3 }
0x1a1a   :  { %v2186_v26 = vpop.eup %2185 }
0x1a1b   :  { %v1161_v24 = vadd.f32 1.0, %v2186_v26 }
0x1a1d   :  { %2187 = vrcp.f32 %v1161_v24 }
0x1a27   :  { %v2188_v27 = vpop.eup %2187 }
0x1a28   :  { %v1165_v59 = vmul.f32 %v2188_v27, %v1103_v60 }
0x1a8b   :  { %v1168_v28 = vpop.permute.xlu1 %1167 }
0x1a8c   :  { %v1170_v29 = vmul.f32 %v2188_v27, %v1168_v28 }
0x1a8e   :  { %1172 = vrot.lane.b32.xlu0 %v1170_v29, %s2381_s3 }
0x1b00   :  { %v1173_v31 = vpop.permute.xlu0 %1172 }
0x1b01   :  { %v1175_v32 = vadd.f32 %v1173_v31, %v1165_v59 }
0x1b03   :  { %2189 = vtanh.f32 %v1175_v32 }
0x1b0d   :  { %v2190_v33 = vpop.eup %2189 }
0x1b0e   :  { %1178 = vrot.lane.b32.xlu1 %v2190_v33, %s2381_s3 }
0x1b80   :  { %v1179_v34 = vpop.permute.xlu1 %1178 }
0x1b81   :  { %v1181_v35 = vmul.f32 %v2188_v27, %v1179_v34 }
0x1b83   :  { %v1182_v36 = vpack.c.bf16 %v1181_v35, %v1181_v35 }
0x1b85   :  { %1184 = vrot.lane.b32.xlu0 %v1182_v36, %s2373_s29 }
0x1bf7   :  { %v1185_v37 = vpop.permute.xlu0 %1184 }
0x1bf8   :  { %2005 = vmatmul.mubr.msk.bf16.vlgmr.msra.gmra.mrb[20].mxu1 %vm243_vm3, %v1185_v37 }
0x1bf9   :  { %2017 = vmatpush3.bf16.msra.mxu1 %v2681_v57  ;;  %2020 = vmatprep.mubr.msk.bf16.mxu1 %vm2379_vm0, %v2378_v0 }
0x1bfa   :  { %2018 = vmatprep.subr.bf16.mxu1 %v2378_v0 }
0x1bfd   :  { %2019 = vmatpush3.bf16.msra.mxu1 %v2686_v48 }
0x1bfe   :  { %2032 = vmatprep.subr.bf16.mxu1 %v2378_v0 }
0x1ccb   :  { %v1223_v39 = vpop.f32.mrb[20].mxu1 }
0x1ccc   :  { %v1229_v40 = vadd.f32 %v1223_v39, %v942_v38  ;;  %v2006_v41 = vpop.f32.mrb[21].mxu1 }
0x1ccd   :  { %v1226_v42 = vpop.f32.mrb[22].mxu1 }
0x1cce   :  { %2191 = vtanh.f32 %v1229_v40  ;;  %v2007_v43 = vpop.f32.mrb[23].mxu1  ;;  %v1797_v18 = vmul.f32 -1.442695, %v1229_v40  ;;  %v955_v42 = vadd.f32 %v2759_v13, %v2715_v5 }
0x1cd0   :  { %2193 = vpow2.f32 %v1797_v18 }
0x1cd8   :  { %v2192_v44 = vpop.eup %2191 }
0x1cd9   :  { %1239 = vrot.lane.b32.xlu1 %v2192_v44, %s2381_s3 }
0x1cda   :  { %v2194_v14 = vpop.eup %2193 }
0x1cdb   :  { %v1233_v45 = vadd.f32 1.0, %v2194_v14 }
0x1cdd   :  { %2195 = vrcp.f32 %v1233_v45 }
0x1ce7   :  { %v2196_v46 = vpop.eup %2195 }
0x1ce8   :  { %v1237_v61 = vmul.f32 %v2196_v46, %v1175_v32 }
0x1d4b   :  { %v1240_v47 = vpop.permute.xlu1 %1239 }
0x1d4c   :  { %v1242_v49 = vmul.f32 %v2196_v46, %v1240_v47 }
0x1d4e   :  { %1244 = vrot.lane.b32.xlu0 %v1242_v49, %s2381_s3 }
0x1dc0   :  { %v1245_v1 = vpop.permute.xlu0 %1244 }
0x1dc1   :  { %v1247_v50 = vadd.f32 %v1245_v1, %v1237_v61 }
0x1dc3   :  { %2197 = vtanh.f32 %v1247_v50 }
0x1dcd   :  { %v2198_v30 = vpop.eup %2197 }
0x1dce   :  { %1250 = vrot.lane.b32.xlu1 %v2198_v30, %s2381_s3 }
0x1e40   :  { %v1251_v51 = vpop.permute.xlu1 %1250 }
0x1e41   :  { %v1253_v52 = vmul.f32 %v2196_v46, %v1251_v51 }
0x1e43   :  { %v1254_v53 = vpack.c.bf16 %v1253_v52, %v1253_v52 }
0x1e45   :  { %1256 = vrot.lane.b32.xlu0 %v1254_v53, %s2373_s29 }
0x1eb7   :  { %v1257_v54 = vpop.permute.xlu0 %1256 }
0x1eb8   :  { %2013 = vmatmul.mubr.msk.bf16.vlgmr.msra.gmra.mrb[40].mxu0 %vm243_vm3, %v1257_v54 }
0x1eb9   :  { %2025 = vmatpush3.bf16.msra.mxu0 %v2681_v57  ;;  %2028 = vmatprep.mubr.msk.bf16.mxu0 %vm2379_vm0, %v2378_v0 }
0x1eba   :  { %2026 = vmatprep.subr.bf16.mxu0 %v2378_v0 }
0x1ebd   :  { %2027 = vmatpush3.bf16.msra.mxu0 %v2686_v48 }
0x1ebe   :  { %2040 = vmatprep.subr.bf16.mxu0 %v2378_v0 }
0x1f8b   :  { %v1295_v56 = vpop.f32.mrb[40].mxu0 }
0x1f8c   :  { %v1301_v58 = vadd.f32 %v1295_v56, %v947_v55  ;;  %v2014_v60 = vpop.f32.mrb[41].mxu0 }
0x1f8d   :  { %v1298_v63 = vpop.f32.mrb[42].mxu0  ;;  %v958_v60 = vadd.f32 %v2763_v16, %v2715_v5 }
0x1f8e   :  { %2199 = vtanh.f32 %v1301_v58  ;;  %v2015_v8 = vpop.f32.mrb[43].mxu0  ;;  %v1799_v2 = vmul.f32 -1.442695, %v1301_v58 }
0x1f90   :  { %2201 = vpow2.f32 %v1799_v2 }
0x1f98   :  { %v2200_v20 = vpop.eup %2199 }
0x1f99   :  { %1311 = vrot.lane.b32.xlu1 %v2200_v20, %s2381_s3 }
0x1f9a   :  { %v2202_v3 = vpop.eup %2201 }
0x1f9b   :  { %v1305_v7 = vadd.f32 1.0, %v2202_v3 }
0x1f9d   :  { %2203 = vrcp.f32 %v1305_v7 }
0x1fa7   :  { %v2204_v9 = vpop.eup %2203 }
0x1fa8   :  { %v1309_v15 = vmul.f32 %v2204_v9, %v1247_v50 }
0x200b   :  { %v1312_v10 = vpop.permute.xlu1 %1311 }
0x200c   :  { %v1314_v12 = vmul.f32 %v2204_v9, %v1312_v10 }
0x200e   :  { %1316 = vrot.lane.b32.xlu0 %v1314_v12, %s2381_s3 }
0x2080   :  { %v1317_v17 = vpop.permute.xlu0 %1316 }
0x2081   :  { %v1319_v4 = vadd.f32 %v1317_v17, %v1309_v15 }
0x2083   :  { %2205 = vtanh.f32 %v1319_v4 }
0x208d   :  { %v2206_v19 = vpop.eup %2205 }
0x208e   :  { %1322 = vrot.lane.b32.xlu1 %v2206_v19, %s2381_s3 }
0x2100   :  { %v1323_v21 = vpop.permute.xlu1 %1322 }
0x2101   :  { %v1325_v23 = vmul.f32 %v2204_v9, %v1323_v21 }
0x2103   :  { %v1326_v25 = vpack.c.bf16 %v1325_v23, %v1325_v23 }
0x2105   :  { %1328 = vrot.lane.b32.xlu0 %v1326_v25, %s2373_s29  ;;  %v2093_v25 = vld [vmem:[#allocation10] sm:$0xff]  }
0x2177   :  { %v1329_v6 = vpop.permute.xlu0 %1328 }
0x2178   :  { %2021 = vmatmul.mubr.msk.bf16.vlgmr.msra.gmra.mrb[24].mxu1 %vm243_vm3, %v1329_v6  ;;  %v2094_v6 = vld [vmem:[#allocation10 + $0x8] sm:$0xff]  }
0x2179   :  { %2033 = vmatpush3.bf16.msra.mxu1 %v2681_v57  ;;  %2036 = vmatprep.mubr.msk.bf16.mxu1 %vm2379_vm0, %v2378_v0 }
0x217a   :  { %2034 = vmatprep.subr.bf16.mxu1 %v2378_v0 }
0x217d   :  { %2035 = vmatpush3.bf16.msra.mxu1 %v2686_v48 }
0x217e   :  { %2048 = vmatprep.subr.bf16.mxu1 %v2378_v0 }
0x224b   :  { %v1367_v26 = vpop.f32.mrb[24].mxu1 }
0x224c   :  { %v1373_v24 = vadd.f32 %v1367_v26, %v950_v11  ;;  %v2022_v27 = vpop.f32.mrb[25].mxu1 }
0x224d   :  { %v1370_v28 = vpop.f32.mrb[26].mxu1  ;;  %v2097_v27 = vld [vmem:[%s2891_s9 + $0x10] sm:$0xff]  }
0x224e   :  { %2207 = vtanh.f32 %v1373_v24  ;;  %v2023_v29 = vpop.f32.mrb[27].mxu1  ;;  %v1801_v57 = vmul.f32 -1.442695, %v1373_v24  ;;  %v2096_v24 = vld [vmem:[%s2891_s9 + $0x8] sm:$0xff]   ;;  %v2098_v28 = vld [vmem:[%s2891_s9 + $0x18] sm:$0xff]  }
0x224f   :  { %v2099_v29 = vld [vmem:[%s2891_s9 + $0x20] sm:$0xff]  }
0x2250   :  { %2209 = vpow2.f32 %v1801_v57 }
0x2258   :  { %v2208_v59 = vpop.eup %2207 }
0x2259   :  { %1383 = vrot.lane.b32.xlu1 %v2208_v59, %s2381_s3  ;;  %v2100_v59 = vld [vmem:[%s2891_s9 + $0x28] sm:$0xff]  }
0x225a   :  { %v2210_v31 = vpop.eup %2209 }
0x225b   :  { %v1377_v32 = vadd.f32 1.0, %v2210_v31 }
0x225d   :  { %2211 = vrcp.f32 %v1377_v32 }
0x2267   :  { %v2212_v48 = vpop.eup %2211 }
0x2268   :  { %v1381_v22 = vmul.f32 %v2212_v48, %v1319_v4 }
0x22cb   :  { %v1384_v33 = vpop.permute.xlu1 %1383 }
0x22cc   :  { %v1386_v34 = vmul.f32 %v2212_v48, %v1384_v33 }
0x22ce   :  { %1388 = vrot.lane.b32.xlu0 %v1386_v34, %s2381_s3 }
0x2340   :  { %v1389_v35 = vpop.permute.xlu0 %1388 }
0x2341   :  { %v1391_v36 = vadd.f32 %v1389_v35, %v1381_v22  ;;  %v2101_v22 = vld [vmem:[%s2891_s9 + $0x30] sm:$0xff]   ;;  %v2102_v35 = vld [vmem:[%s2891_s9 + $0x38] sm:$0xff]  }
0x2343   :  { %2213 = vtanh.f32 %v1391_v36 }
0x234d   :  { %v2214_v37 = vpop.eup %2213 }
0x234e   :  { %1394 = vrot.lane.b32.xlu1 %v2214_v37, %s2381_s3 }
0x23c0   :  { %v1395_v38 = vpop.permute.xlu1 %1394 }
0x23c1   :  { %v1397_v39 = vmul.f32 %v2212_v48, %v1395_v38 }
0x23c3   :  { %v1398_v40 = vpack.c.bf16 %v1397_v39, %v1397_v39 }
0x23c5   :  { %1400 = vrot.lane.b32.xlu0 %v1398_v40, %s2373_s29 }
0x2437   :  { %v1401_v41 = vpop.permute.xlu0 %1400 }
0x2438   :  { %2029 = vmatmul.mubr.msk.bf16.vlgmr.msra.gmra.mrb[44].mxu0 %vm243_vm3, %v1401_v41 }
0x2439   :  { %2044 = vmatprep.mubr.msk.bf16.mxu0 %vm2379_vm0, %v2378_v0  ;;  %2041 = vmatpush3.bf16.msra.mxu0 %v2093_v25 }
0x243a   :  { %2042 = vmatprep.subr.bf16.mxu0 %v2378_v0 }
0x243d   :  { %2043 = vmatpush3.bf16.msra.mxu0 %v2094_v6 }
0x250b   :  { %v1439_v43 = vpop.f32.mrb[44].mxu0 }
0x250c   :  { %v1445_v44 = vadd.f32 %v1439_v43, %v955_v42  ;;  %v2030_v18 = vpop.f32.mrb[45].mxu0 }
0x250d   :  { %v1442_v14 = vpop.f32.mrb[46].mxu0 }
0x250e   :  { %2215 = vtanh.f32 %v1445_v44  ;;  %v2031_v45 = vpop.f32.mrb[47].mxu0  ;;  %v1803_v47 = vmul.f32 -1.442695, %v1445_v44 }
0x2510   :  { %2217 = vpow2.f32 %v1803_v47 }
0x2518   :  { %v2216_v46 = vpop.eup %2215 }
0x2519   :  { %1455 = vrot.lane.b32.xlu1 %v2216_v46, %s2381_s3 }
0x251a   :  { %v2218_v49 = vpop.eup %2217 }
0x251b   :  { %v1449_v61 = vadd.f32 1.0, %v2218_v49 }
0x251d   :  { %2219 = vrcp.f32 %v1449_v61 }
0x2527   :  { %v2220_v1 = vpop.eup %2219 }
0x2528   :  { %v1453_v13 = vmul.f32 %v2220_v1, %v1391_v36  ;;  %v1806_v36 = vld [vmem:[#allocation12] ss:$0 sm:$0xff] }
0x258b   :  { %v1456_v50 = vpop.permute.xlu1 %1455 }
0x258c   :  { %v1458_v30 = vmul.f32 %v2220_v1, %v1456_v50 }
0x258e   :  { %1460 = vrot.lane.b32.xlu0 %v1458_v30, %s2381_s3 }
0x2600   :  { %v1461_v51 = vpop.permute.xlu0 %1460 }
0x2601   :  { %v1463_v52 = vadd.f32 %v1461_v51, %v1453_v13 }
0x2603   :  { %2221 = vtanh.f32 %v1463_v52 }
0x260d   :  { %v2222_v53 = vpop.eup %2221 }
0x260e   :  { %1466 = vrot.lane.b32.xlu1 %v2222_v53, %s2381_s3 }
0x2680   :  { %v1467_v54 = vpop.permute.xlu1 %1466 }
0x2681   :  { %v1469_v55 = vmul.f32 %v2220_v1, %v1467_v54 }
0x2683   :  { %v1470_v56 = vpack.c.bf16 %v1469_v55, %v1469_v55 }
0x2685   :  { %1472 = vrot.lane.b32.xlu0 %v1470_v56, %s2373_s29 }
0x26f7   :  { %v1473_v58 = vpop.permute.xlu0 %1472 }
0x26f8   :  { %2037 = vmatmul.mubr.msk.bf16.vlgmr.msra.gmra.mrb[28].mxu1 %vm243_vm3, %v1473_v58 }
0x26f9   :  { %2064 = vmatprep.mubr.msk.bf16.mxu1 %vm2379_vm0, %v2378_v0 }
0x27cb   :  { %v1511_v63 = vpop.f32.mrb[28].mxu1 }
0x27cc   :  { %v1517_v8 = vadd.f32 %v1511_v63, %v958_v60  ;;  %v2038_v20 = vpop.f32.mrb[29].mxu1 }
0x27cd   :  { %v1514_v2 = vpop.f32.mrb[30].mxu1 }
0x27ce   :  { %2223 = vtanh.f32 %v1517_v8  ;;  %v2039_v3 = vpop.f32.mrb[31].mxu1  ;;  %v1805_v9 = vmul.f32 -1.442695, %v1517_v8 }
0x27d0   :  { %2225 = vpow2.f32 %v1805_v9 }
0x27d8   :  { %v2224_v7 = vpop.eup %2223 }
0x27d9   :  { %1527 = vrot.lane.b32.xlu1 %v2224_v7, %s2381_s3 }
0x27da   :  { %v2226_v10 = vpop.eup %2225 }
0x27db   :  { %v1521_v12 = vadd.f32 1.0, %v2226_v10 }
0x27dd   :  { %2227 = vrcp.f32 %v1521_v12 }
0x27e7   :  { %v2228_v15 = vpop.eup %2227 }
0x27e8   :  { %v1525_v5 = vmul.f32 %v2228_v15, %v1463_v52 }
0x284b   :  { %v1528_v17 = vpop.permute.xlu1 %1527 }
0x284c   :  { %v1530_v4 = vmul.f32 %v2228_v15, %v1528_v17 }
0x284e   :  { %1532 = vrot.lane.b32.xlu0 %v1530_v4, %s2381_s3 }
0x2852   :  { %849 = vrot.lane.b32.xlu0 %v2741_v62, %s2373_s29  ;;  %v2095_v62 = vld [vmem:[%s2891_s9] sm:$0xff]   ;;  %s2341_s9 = scalar_lea.vmem %s1742_s26, 256 }
0x2853   :  { %2049 = vmatpush3.bf16.msra.mxu1 %v2095_v62  ;;  %p2342_p12 = scmp.ne.s32.totalorder %s1742_s26, %s2341_s9  ;;  %p2347_p0 = scmp.lt.s32.totalorder %s2341_s9, %s2341_s9 }
0x2854   :  { %2050 = vmatprep.subr.bf16.mxu1 %v2378_v0 }
0x2855   :  { %p2348_p1 = por %p2347_p0, %p2346_p13 }
0x2857   :  { %2051 = vmatpush3.bf16.msra.mxu1 %v2096_v24  ;;  %p2349_p2 = pnand %p2348_p1, %p2342_p12 }
0x2858   :  { %2052 = vmatprep.subr.bf16.mxu1 %v2378_v0 }
0x285b   :  { %2053 = vmatpush3.bf16.msra.mxu1 %v2097_v27 }
0x285c   :  { %2054 = vmatprep.subr.bf16.mxu1 %v2378_v0 }
0x285f   :  { %2055 = vmatpush3.bf16.msra.mxu1 %v2098_v28 }
0x2860   :  { %2056 = vmatprep.subr.bf16.mxu1 %v2378_v0 }
0x2863   :  { %2057 = vmatpush3.bf16.msra.mxu1 %v2099_v29 }
0x2864   :  { %2058 = vmatprep.subr.bf16.mxu1 %v2378_v0 }
0x2867   :  { %2059 = vmatpush3.bf16.msra.mxu1 %v2100_v59 }
0x2868   :  { %2060 = vmatprep.subr.bf16.mxu1 %v2378_v0 }
0x286b   :  { %2061 = vmatpush3.bf16.msra.mxu1 %v2101_v22 }
0x286c   :  { %2062 = vmatprep.subr.bf16.mxu1 %v2378_v0  ;;  %v1810_v0 = vld [vmem:[%s2892_s10] ss:$0 sm:$0xff] }
0x286f   :  { %2063 = vmatpush3.bf16.msra.mxu1 %v2102_v35 }
0x28c0   :  { %v1533_v16 = vpop.permute.xlu0 %1532 }
0x28c1   :  { %v1535_v19 = vadd.f32 %v1533_v16, %v1525_v5 }
0x28c3   :  { %2229 = vtanh.f32 %v1535_v19 }
0x28c4   :  { %v850_v21 = vpop.permute.xlu0 %849 }
0x28c5   :  { %852 = vst.msk [vmem:[#allocation3] sm:$0xff] %vm243_vm3, %v850_v21 }
0x28cc   :  { %v1547_v31 = vld [vmem:[#allocation3] sm:$0xff] }
0x28cd   :  { %v2230_v23 = vpop.eup %2229  ;;  %v1549_v48 = vmax.f32 %v1547_v31, 0.0 }
0x28ce   :  { %1538 = vrot.lane.b32.xlu1 %v2230_v23, %s2381_s3 }
0x2940   :  { %v1539_v11 = vpop.permute.xlu1 %1538 }
0x2941   :  { %v1541_v26 = vmul.f32 %v2228_v15, %v1539_v11 }
0x2943   :  { %1543 = vrot.lane.b32.xlu1 %v1541_v26, %s2373_s29 }
0x29b5   :  { %v1544_v57 = vpop.permute.xlu1 %1543 }
0x29b6   :  { %1546 = vst.msk [vmem:[#allocation3 + $0x8] sm:$0xff] %vm243_vm3, %v1544_v57 }
0x29bd   :  { %v1548_v32 = vld [vmem:[#allocation3 + $0x8] sm:$0xff] }
0x29be   :  { %v1550_v33 = vmax.f32 %v1548_v32, 0.0 }
0x29c0   :  { %v1551_v34 = vpack.c.bf16 %v1550_v33, %v1549_v48 }
0x29c2   :  { %2045 = vmatmul.mubr.msk.bf16.vlgmr.msra.gmra.mrb[48].mxu0 %vm243_vm3, %v1551_v34 }
0x2a95   :  { %v1612_v37 = vpop.f32.mrb[48].mxu0 }
0x2a96   :  { %v1613_v38 = vadd.f32 %v1806_v36, %v1612_v37  ;;  %v2046_v39 = vpop.f32.mrb[49].mxu0 }
0x2a97   :  { %v1615_v40 = vpop.f32.mrb[50].mxu0 }
0x2a98   :  { %v1616_v41 = vadd.f32 %v1806_v36, %v1615_v40  ;;  %v2047_v42 = vpop.f32.mrb[51].mxu0  ;;  %v1619_v43 = vmax.f32 %v1613_v38, 0.0 }
0x2a9a   :  { %v1620_v44 = vmax.f32 %v1616_v41, 0.0 }
0x2a9c   :  { %v1621_v18 = vpack.c.bf16 %v1620_v44, %v1619_v43 }
0x2a9e   :  { %2065 = vmatmul.mubr.bf16.vlgmr.msra.gmra.mrb[32].mxu1 %v1621_v18 }
0x2b71   :  { %v1727_v14 = vpop.f32.mrb[32].mxu1 }
0x2b72   :  { %v1728_v45 = vadd.f32 %v1810_v0, %v1727_v14  ;;  %v2066_v46 = vpop.f32.mrb[33].mxu1 }
0x2b73   :  { %v1730_v47 = vpop.f32.mrb[34].mxu1 }
0x2b74   :  { %1734 = vst [vmem:[#allocation13] sm:$0xff] %v1728_v45  ;;  %v1731_v49 = vadd.f32 %v1810_v0, %v1730_v47  ;;  %v2067_v61 = vpop.f32.mrb[35].mxu1 }
0x2b76   :  { %1735 = vst [vmem:[#allocation13 + $0x8] sm:$0xff] %v1731_v49 }
0x2b77   :  { %2352 = shalt.err (!%p2349_p2)
}
0x2b78   :  { %s2353_s1 = scalar_lea.hbm %s2893_s11, 256 }
0x2b79   :  { %p2354_p3 = scmp.ne.s32.totalorder %s2893_s11, %s2353_s1  ;;  %p2357_p4 = scmp.lt.u32.totalorder %s2353_s1, %s2893_s11 }
0x2b7b   :  { %p2359_p5 = pnand %p2357_p4, %p2354_p3 }
0x2b7d   :  { %2362 = shalt.err (!%p2359_p5)
}
0x2b7e   :  { %s2383_s12 = smov 128   ;;  %s2384_s13 = smov 8  }
0x2b7f   :  { %1747 = dma.vmem_to_hbm [thread:$0]  %s1742_s26, 256, %s2893_s11, [#allocation6], %s2383_s12, %s2383_s12, %s2384_s13  }
0x2b80   :  { %2369 = dma.done.wait [#allocation6], 256  }
0x2b81   :  { %2370 = vsyncadd [#allocation6], 4294967040 }
0x2b82   :  { %1751 = vsyncpa [#allocation5], 1 }
0x2b83   :  { %1752 = vsyncpa [#allocation8], 1 }
0x2b84   :  { %1753 = vsyncpa [#allocation11], 1 }
0x2b85   :  { %1754 = vsyncpa [#allocation6], 1 }

</bundles_post_ra>
